<compile_context>
chip_gen: v5e
topology: v5e:2x2
jax: 0.10.0
libtpu: 0.0.40
codegen_flags: <defaults>
</compile_context>

<pallas_src>
import functools

import jax
import jax.numpy as jnp
from jax import lax
from jax.experimental import pallas as pl
from jax.experimental.pallas import tpu as pltpu


def _round_up(x, m):
    return ((x + m - 1) // m) * m


def _cdiv(a, b):
    return -(-a // b)


def _chip_config():
    """Per-generation tile sizes / VMEM limits (v5e / v6e / v7x)."""
    kind = ""
    try:
        kind = jax.devices()[0].device_kind.lower()
    except Exception:
        pass
    vmem_cap = 128 * 1024 * 1024
    try:
        vmem_cap = int(pltpu.get_tpu_info().vmem_capacity_bytes)
    except Exception:
        pass
    small_vmem = vmem_cap <= 64 * 1024 * 1024

    def _limit(target):
        return min(target, max(vmem_cap - 8 * 1024 * 1024, 32 * 1024 * 1024))

    if "v7" in kind or small_vmem:
        # v7x: 64 MiB physical VMEM -> leave headroom; 2 TCs -> want >=2 token tiles.
        return dict(tm_max=512, ti_target=512, min_tiles=2,
                    vmem_limit=_limit(52 * 1024 * 1024))
    if "v5" in kind:
        # v5e ridge ~240 flops/byte -> tm=512 is safely MXU-bound.
        return dict(tm_max=512, ti_target=1024, min_tiles=1,
                    vmem_limit=_limit(96 * 1024 * 1024))
    # v6e (and default for 128 MiB chips): ridge ~650 flops/byte -> tm=1024.
    return dict(tm_max=1024, ti_target=1024, min_tiles=1,
                vmem_limit=_limit(100 * 1024 * 1024))


def _pick_tm(T, tm_max, min_tiles):
    """Token tile: minimize padding waste, multiple of 16 (bf16 sublane packing)."""
    eff_min_tiles = min_tiles if T >= min_tiles * 256 else 1
    n_tiles = max(eff_min_tiles, _cdiv(T, tm_max))
    tm = _round_up(_cdiv(T, n_tiles), 16)
    return min(tm, _round_up(tm_max, 16))


def _mlp_kernel(x_ref, wgu_ref, wd_ref, o_ref, acc_ref, *, ti):
    # x_ref:   (tm, H)        token tile
    # wgu_ref: (2*ti, H)      fused [gate_tile_k ; up_tile_k] weight (PyTorch [I,H] layout)
    # wd_ref:  (H, ti)        down weight tile (PyTorch [H,I] layout, tiled along I)
    # o_ref:   (tm, H)        output tile (same block for every k)
    # acc_ref: (tm, H) f32    down-projection accumulator
    k = pl.program_id(1)

    @pl.when(k == 0)
    def _():
        acc_ref[...] = jnp.zeros_like(acc_ref)

    x = x_ref[...]
    # One MXU pass for gate+up: (tm, 2*ti) = x[tm,H] . wgu[2*ti,H]^T
    # (contraction on the RHS minor dim -> transposed-RHS is MXU-native, no copy).
    dn_rhs_minor = (((1,), (1,)), ((), ()))
    gu = lax.dot_general(x, wgu_ref[...], dn_rhs_minor,
                         preferred_element_type=jnp.float32)
    g = gu[:, :ti]          # lane-aligned static slices (ti is a multiple of 128)
    u = gu[:, ti:]

    # SiLU(g) * u in f32 (sigmoid goes to the EUP slot).
    h = (g * jax.nn.sigmoid(g)) * u

    # Partial down projection: h[tm, ti] . wd[H, ti]^T -> [tm, H]
    acc_ref[...] += lax.dot_general(
        h.astype(wd_ref.dtype), wd_ref[...], dn_rhs_minor,
        preferred_element_type=jnp.float32)

    @pl.when(k == pl.num_programs(1) - 1)
    def _():
        o_ref[...] = acc_ref[...].astype(o_ref.dtype)


def qwen2_mlp_pallas(hidden_states, w_gate, w_up, w_down):
    """hidden_states: [B, S, H]; w_gate/w_up: [I, H]; w_down: [H, I] (PyTorch layout)."""
    B, S, H = hidden_states.shape
    I, H2 = w_gate.shape
    assert H == H2 and w_up.shape == (I, H) and w_down.shape == (H, I)

    cfg = _chip_config()
    T = B * S
    tm = _pick_tm(T, cfg["tm_max"], cfg["min_tiles"])
    T_pad = _round_up(T, tm)

    # Intermediate tile: multiple of 128; I is zero-padded up to a multiple of ti
    # (padded gate/up rows and down columns are zeros -> contribute exactly 0).
    ti = min(cfg["ti_target"], _round_up(I, 128))
    I_pad = _round_up(I, ti)
    nk = I_pad // ti

    dtype = hidden_states.dtype
    x2d = hidden_states.reshape(T, H)
    if T_pad != T:
        x2d = jnp.pad(x2d, ((0, T_pad - T), (0, 0)))

    # Fuse gate+up weights, interleaved per k-tile: rows [2*k*ti, 2*(k+1)*ti) hold
    # [gate rows k*ti:(k+1)*ti ; up rows k*ti:(k+1)*ti].
    pad_i = I_pad - I
    wg_p = jnp.pad(w_gate, ((0, pad_i), (0, 0))) if pad_i else w_gate
    wu_p = jnp.pad(w_up, ((0, pad_i), (0, 0))) if pad_i else w_up
    wd_p = jnp.pad(w_down, ((0, 0), (0, pad_i))) if pad_i else w_down
    w_gu = jnp.concatenate(
        [wg_p.reshape(nk, ti, H), wu_p.reshape(nk, ti, H)], axis=1
    ).reshape(2 * I_pad, H)

    grid = (T_pad // tm, nk)
    itemsize = jnp.dtype(dtype).itemsize
    cost = pl.CostEstimate(
        flops=6 * T_pad * H * I_pad,
        transcendentals=T_pad * I_pad,
        bytes_accessed=3 * I_pad * H * itemsize * grid[0] + 2 * T_pad * H * itemsize,
    )

    out2d = pl.pallas_call(
        functools.partial(_mlp_kernel, ti=ti),
        out_shape=jax.ShapeDtypeStruct((T_pad, H), dtype),
        grid_spec=pltpu.PrefetchScalarGridSpec(
            num_scalar_prefetch=0,
            grid=grid,
            in_specs=[
                pl.BlockSpec((tm, H), lambda i, k: (i, 0)),       # x token tile
                pl.BlockSpec((2 * ti, H), lambda i, k: (k, 0)),   # fused gate+up tile
                pl.BlockSpec((H, ti), lambda i, k: (0, k)),       # down weight tile
            ],
            out_specs=pl.BlockSpec((tm, H), lambda i, k: (i, 0)),
            scratch_shapes=[pltpu.VMEM((tm, H), jnp.float32)],
        ),
        compiler_params=pltpu.CompilerParams(
            dimension_semantics=("parallel", "arbitrary"),
            vmem_limit_bytes=cfg["vmem_limit"],
        ),
        cost_estimate=cost,
    )(x2d, w_gu, wd_p)

    return (out2d[:T].reshape(B, S, H),)


def qwen2_mlp_ref(hidden_states, w_gate, w_up, w_down):
    """Pure-JAX f32 reference with PyTorch-layout weights."""
    x = hidden_states.astype(jnp.float32)
    wg = w_gate.astype(jnp.float32)
    wu = w_up.astype(jnp.float32)
    wd = w_down.astype(jnp.float32)
    g = x @ wg.T
    u = x @ wu.T
    h = jax.nn.silu(g) * u
    return (h @ wd.T,)


if __name__ == "__main__":
    # Small shapes consistent with the module (hidden / intermediate multiples of 128).
    B, S, H, I = 2, 8, 256, 512
    key = jax.random.PRNGKey(0)
    kx, kg, ku, kd = jax.random.split(key, 4)

    dtype = jnp.bfloat16  # MXU-native operand dtype; accumulation stays f32 in-kernel.
    hidden_states = jax.random.normal(kx, (B, S, H), dtype=jnp.float32).astype(dtype)
    # PyTorch nn.Linear layout [out, in].
    w_gate = (jax.random.normal(kg, (I, H), dtype=jnp.float32) * (1.0 / H) ** 0.5).astype(dtype)
    w_up = (jax.random.normal(ku, (I, H), dtype=jnp.float32) * (1.0 / H) ** 0.5).astype(dtype)
    w_down = (jax.random.normal(kd, (H, I), dtype=jnp.float32) * (1.0 / I) ** 0.5).astype(dtype)

    out = qwen2_mlp_pallas(hidden_states, w_gate, w_up, w_down)
    out = jax.block_until_ready(out)

    ref = qwen2_mlp_ref(hidden_states, w_gate, w_up, w_down)
    assert out[0].shape == (B, S, H)
    assert out[0].dtype == dtype
    assert jnp.allclose(out[0].astype(jnp.float32), ref[0], atol=2e-2, rtol=2e-2), \
        "mismatch vs reference"

    print("KERNEL_OK")
</pallas_src>

<mosaic_0001>
module attributes {stable_mosaic.version = 11 : i64} {
  func.func @_mlp_kernel(%arg0: i32, %arg1: i32, %arg2: memref<16x256xbf16, #tpu.memory_space<vmem>>, %arg3: memref<1024x256xbf16, #tpu.memory_space<vmem>>, %arg4: memref<256x512xbf16, #tpu.memory_space<vmem>>, %arg5: memref<16x256xbf16, #tpu.memory_space<vmem>>, %arg6: memref<16x256xf32, #tpu.memory_space<vmem>>) attributes {dimension_semantics = [#tpu.dimension_semantics<parallel>, #tpu.dimension_semantics<arbitrary>], iteration_bounds = array<i64: 1, 1>, scalar_prefetch = 0 : i64, scratch_operands = 1 : i64, tpu.core_type = #tpu.core_type<tc>, window_params = [{transform_indices = @transform_0, window_bounds = array<i64: 16, 256>}, {transform_indices = @transform_1, window_bounds = array<i64: 1024, 256>}, {transform_indices = @transform_2, window_bounds = array<i64: 256, 512>}, {transform_indices = @transform_3, window_bounds = array<i64: 16, 256>}]} {
    %c0_i32 = arith.constant 0 : i32
    %0 = arith.cmpi eq, %arg1, %c0_i32 : i32
    %1 = arith.extui %0 : i1 to i32
    %c0_i32_0 = arith.constant 0 : i32
    %2 = arith.cmpi ne, %1, %c0_i32_0 : i32
    scf.if %2 {
      %cst_14 = arith.constant 0.000000e+00 : f32
      %24 = vector.broadcast %cst_14 : f32 to vector<16x256xf32>
      %c0_15 = arith.constant 0 : index
      %c0_16 = arith.constant 0 : index
      %25 = vector.load %arg6[%c0_15, %c0_16] : memref<16x256xf32, #tpu.memory_space<vmem>>, vector<16x256xf32>
      tpu.vector_store %arg6[%c0_15, %c0_16], %24 {strides = array<i32>} : memref<16x256xf32, #tpu.memory_space<vmem>>, vector<16x256xf32>,
    } else {
    }
    %c0 = arith.constant 0 : index
    %c0_1 = arith.constant 0 : index
    %3 = vector.load %arg2[%c0, %c0_1] : memref<16x256xbf16, #tpu.memory_space<vmem>>, vector<16x256xbf16>
    %c0_2 = arith.constant 0 : index
    %c0_3 = arith.constant 0 : index
    %4 = vector.load %arg3[%c0_2, %c0_3] : memref<1024x256xbf16, #tpu.memory_space<vmem>>, vector<1024x256xbf16>
    %cst = arith.constant dense<0.000000e+00> : vector<16x1024xf32>
    %5 = tpu.matmul %3, %4, %cst {dimension_numbers = #tpu.dot_dimension_numbers<[1], [1], [0], [0], [0, 0, 1, 0], [], []>} : vector<16x256xbf16>, vector<1024x256xbf16>, vector<16x1024xf32> -> vector<16x1024xf32>
    %6 = vector.extract_strided_slice %5 {offsets = [0, 0], sizes = [16, 512], strides = [1, 1]} : vector<16x1024xf32> to vector<16x512xf32>
    %7 = vector.extract_strided_slice %5 {offsets = [0, 512], sizes = [16, 512], strides = [1, 1]} : vector<16x1024xf32> to vector<16x512xf32>
    %8 = arith.negf %6 : vector<16x512xf32>
    %9 = math.exp %8 : vector<16x512xf32>
    %cst_4 = arith.constant 1.000000e+00 : f32
    %10 = vector.broadcast %cst_4 : f32 to vector<16x512xf32>
    %11 = arith.addf %10, %9 : vector<16x512xf32>
    %12 = arith.divf %10, %11 : vector<16x512xf32>
    %13 = arith.mulf %6, %12 : vector<16x512xf32>
    %14 = arith.mulf %13, %7 : vector<16x512xf32>
    %c0_5 = arith.constant 0 : index
    %c0_6 = arith.constant 0 : index
    %15 = vector.load %arg6[%c0_5, %c0_6] : memref<16x256xf32, #tpu.memory_space<vmem>>, vector<16x256xf32>
    %16 = arith.truncf %14 : vector<16x512xf32> to vector<16x512xbf16>
    %c0_7 = arith.constant 0 : index
    %c0_8 = arith.constant 0 : index
    %17 = vector.load %arg4[%c0_7, %c0_8] : memref<256x512xbf16, #tpu.memory_space<vmem>>, vector<256x512xbf16>
    %cst_9 = arith.constant dense<0.000000e+00> : vector<16x256xf32>
    %18 = tpu.matmul %16, %17, %cst_9 {dimension_numbers = #tpu.dot_dimension_numbers<[1], [1], [0], [0], [0, 0, 1, 0], [], []>} : vector<16x512xbf16>, vector<256x512xbf16>, vector<16x256xf32> -> vector<16x256xf32>
    %19 = arith.addf %15, %18 : vector<16x256xf32>
    %c0_10 = arith.constant 0 : index
    %c0_11 = arith.constant 0 : index
    %20 = vector.load %arg6[%c0_10, %c0_11] : memref<16x256xf32, #tpu.memory_space<vmem>>, vector<16x256xf32>
    tpu.vector_store %arg6[%c0_10, %c0_11], %19 {strides = array<i32>} : memref<16x256xf32, #tpu.memory_space<vmem>>, vector<16x256xf32>,
    %c0_i32_12 = arith.constant 0 : i32
    %21 = arith.cmpi eq, %arg1, %c0_i32_12 : i32
    %22 = arith.extui %21 : i1 to i32
    %c0_i32_13 = arith.constant 0 : i32
    %23 = arith.cmpi ne, %22, %c0_i32_13 : i32
    scf.if %23 {
      %c0_14 = arith.constant 0 : index
      %c0_15 = arith.constant 0 : index
      %24 = vector.load %arg6[%c0_14, %c0_15] : memref<16x256xf32, #tpu.memory_space<vmem>>, vector<16x256xf32>
      %25 = arith.truncf %24 : vector<16x256xf32> to vector<16x256xbf16>
      %c0_16 = arith.constant 0 : index
      %c0_17 = arith.constant 0 : index
      %26 = vector.load %arg5[%c0_16, %c0_17] : memref<16x256xbf16, #tpu.memory_space<vmem>>, vector<16x256xbf16>
      tpu.vector_store %arg5[%c0_16, %c0_17], %25 {strides = array<i32>} : memref<16x256xbf16, #tpu.memory_space<vmem>>, vector<16x256xbf16>,
    } else {
    }
    return
  }
  func.func @transform_0(%arg0: i32, %arg1: i32) -> (i32, i32) {
    %c0_i32 = arith.constant 0 : i32
    %c0_i32_0 = arith.constant 0 : i32
    return %arg0, %c0_i32 : i32, i32
  }
  func.func @transform_1(%arg0: i32, %arg1: i32) -> (i32, i32) {
    %c0_i32 = arith.constant 0 : i32
    %c0_i32_0 = arith.constant 0 : i32
    return %arg1, %c0_i32 : i32, i32
  }
  func.func @transform_2(%arg0: i32, %arg1: i32) -> (i32, i32) {
    %c0_i32 = arith.constant 0 : i32
    %c0_i32_0 = arith.constant 0 : i32
    return %c0_i32, %arg1 : i32, i32
  }
  func.func @transform_3(%arg0: i32, %arg1: i32) -> (i32, i32) {
    %c0_i32 = arith.constant 0 : i32
    %c0_i32_0 = arith.constant 0 : i32
    return %arg0, %c0_i32 : i32, i32
  }
}

</mosaic_0001>

<bundles_post_ra>
// kernel: tpu_custom_call.1
= control target key start
LH: loop header
LB: loop body
LE: loop exit
PB: predicated region body
PF: predicated region fallthrough
CT: control target
= control target key end

     0   :  { %8 = vsyncpa [#allocation4], 0  ;;  %s3214_s0 = inlined_call_operand.hbm [shape: bf16[16,256], index: 0, kind: input, shape index: {}]   ;;  %s3215_s1 = inlined_call_operand.hbm [shape: bf16[1024,256], index: 1, kind: input, shape index: {}]   ;;  %s3216_s2 = inlined_call_operand.hbm [shape: bf16[256,512], index: 2, kind: input, shape index: {}]   ;;  %s3217_s3 = inlined_call_operand.hbm [shape: bf16[16,256], index: 3, kind: output, shape index: {}]  }
   0x1   :  { %9 = vsyncpa [#allocation7], 0 }
   0x2   :  { %10 = vsyncpa [#allocation5], 0  ;;  %s28_s14 = sshll.u32 %s3215_s1, 4  ;;  %s2905_s15 = smov [#allocation6]   ;;  %s29_s14 = int_to_ptr.hbm [resolvable:$true] %s28_s14 }
   0x3   :  { %s30_s16 = sshll.u32 %s2905_s15, 4  ;;  %s15_s19 = sshll.u32 %s3214_s0, 4  ;;  %s31_s16 = int_to_ptr.vmem [resolvable:$true] %s30_s16  ;;  %s16_s19 = int_to_ptr.hbm [resolvable:$true] %s15_s19 }
   0x4   :  { %s2906_s20 = smov 128   ;;  %s2907_s21 = smov 8  }
   0x5   :  { %36 = dma.hbm_to_vmem [thread:$0]  %s29_s14, 16384, %s31_s16, [#allocation7], %s2906_s20, %s2906_s20, %s2907_s21  }
   0x6   :  { %s2908_s22 = smov [#allocation3]   ;;  %s41_s1 = sshll.u32 %s3216_s2, 4  ;;  %s42_s1 = int_to_ptr.hbm [resolvable:$true] %s41_s1 }
   0x7   :  { %s17_s23 = sshll.u32 %s2908_s22, 4  ;;  %s2909_s0 = smov [#allocation8]   ;;  %s18_s23 = int_to_ptr.vmem [resolvable:$true] %s17_s23 }
   0x8   :  { %23 = dma.hbm_to_vmem [thread:$0]  %s16_s19, 256, %s18_s23, [#allocation4], %s2906_s20, %s2906_s20, %s2907_s21  }
   0x9   :  { %s43_s26 = sshll.u32 %s2909_s0, 4  ;;  %s2910_s27 = smov 256   ;;  %s44_s26 = int_to_ptr.vmem [resolvable:$true] %s43_s26 }
   0xa   :  { %s2911_s28 = smov 16  }
   0xb   :  { %49 = dma.hbm_to_vmem [thread:$0]  %s42_s1, 8192, %s44_s26, [#allocation7], %s2910_s27, %s2910_s27, %s2911_s28  }
   0xc   :  { %2899 = dma.done.wait [#allocation4], 256  }
   0xd   :  { %2900 = vsyncadd [#allocation4], 4294967040 }
   0xe   :  { %2901 = dma.done.wait [#allocation7], 24576  }
   0xf   :  { %2902 = vsyncadd [#allocation7], 4294942720  ;;  %v1851_v0 = vld [vmem:[#allocation6 + $0x70] sm:$0xf]  ;;  %v2586_v1 = vld [vmem:[#allocation6 + $0x74] sm:$0xf0] }
  0x10   :  { %v2585_v2 = vld [vmem:[#allocation6 + $0x74] sm:$0xf]  ;;  %v1852_v3 = vor.u32 %v2586_v1, %v1851_v0  ;;  %v1853_v4 = vld [vmem:[#allocation6 + $0x78] sm:$0xf0]  ;;  %v1915_v5 = vld [vmem:[#allocation6 + $0xf0] sm:$0xf] }
  0x11   :  { %v2602_v6 = vld [vmem:[#allocation6 + $0xf4] sm:$0xf0]  ;;  %v1856_v7 = vor.u32 %v2585_v2, %v1853_v4  ;;  %v2601_v9 = vld [vmem:[#allocation6 + $0xf4] sm:$0xf]  ;;  %v1917_v10 = vld [vmem:[#allocation6 + $0xf8] sm:$0xf0] }
  0x12   :  { %v1916_v8 = vor.u32 %v2602_v6, %v1915_v5  ;;  %850 = vmatpush.bf16.xpose.msra.mxu0 %v1852_v3  ;;  %v1920_v11 = vor.u32 %v2601_v9, %v1917_v10  ;;  %v1843_v12 = vld [vmem:[#allocation6 + $0x60] sm:$0xf]  ;;  %v2584_v13 = vld [vmem:[#allocation6 + $0x64] sm:$0xf0]  ;;  %v2583_v14 = vld [vmem:[#allocation6 + $0x64] sm:$0xf] }
  0x13   :  { %864 = vmatpush.bf16.xpose.msra.mxu1 %v1856_v7  ;;  %v1845_v15 = vld [vmem:[#allocation6 + $0x68] sm:$0xf0]  ;;  %v1907_v16 = vld [vmem:[#allocation6 + $0xe0] sm:$0xf]  ;;  %v2600_v17 = vld [vmem:[#allocation6 + $0xe4] sm:$0xf0]  ;;  %v1844_v20 = vor.u32 %v2584_v13, %v1843_v12 }
  0x14   :  { %878 = vmatpush.bf16.xpose.msra.mxu2 %v1916_v8  ;;  %892 = vmatpush.bf16.xpose.msra.mxu3 %v1920_v11  ;;  %v2599_v18 = vld [vmem:[#allocation6 + $0xe4] sm:$0xf]  ;;  %v1909_v19 = vld [vmem:[#allocation6 + $0xe8] sm:$0xf0]  ;;  %v1848_v21 = vor.u32 %v2583_v14, %v1845_v15  ;;  %v1908_v22 = vor.u32 %v2600_v17, %v1907_v16  ;;  %v1835_v24 = vld [vmem:[#allocation6 + $0x50] sm:$0xf] }
  0x15   :  { %v1912_v23 = vor.u32 %v2599_v18, %v1909_v19  ;;  %v2582_v25 = vld [vmem:[#allocation6 + $0x54] sm:$0xf0]  ;;  %v2581_v26 = vld [vmem:[#allocation6 + $0x54] sm:$0xf]  ;;  %v1837_v27 = vld [vmem:[#allocation6 + $0x58] sm:$0xf0] }
  0x16   :  { %v1899_v28 = vld [vmem:[#allocation6 + $0xd0] sm:$0xf]  ;;  %v2598_v29 = vld [vmem:[#allocation6 + $0xd4] sm:$0xf0]  ;;  %v2597_v30 = vld [vmem:[#allocation6 + $0xd4] sm:$0xf]  ;;  %v1836_v32 = vor.u32 %v2582_v25, %v1835_v24  ;;  %v1840_v33 = vor.u32 %v2581_v26, %v1837_v27 }
  0x17   :  { %v1901_v31 = vld [vmem:[#allocation6 + $0xd8] sm:$0xf0]  ;;  %v1900_v34 = vor.u32 %v2598_v29, %v1899_v28  ;;  %v1827_v36 = vld [vmem:[#allocation6 + $0x40] sm:$0xf]  ;;  %v2580_v37 = vld [vmem:[#allocation6 + $0x44] sm:$0xf0] }
  0x18   :  { %v1904_v35 = vor.u32 %v2597_v30, %v1901_v31  ;;  %v2579_v38 = vld [vmem:[#allocation6 + $0x44] sm:$0xf]  ;;  %v1829_v39 = vld [vmem:[#allocation6 + $0x48] sm:$0xf0]  ;;  %v1891_v40 = vld [vmem:[#allocation6 + $0xc0] sm:$0xf]  ;;  %v1828_v44 = vor.u32 %v2580_v37, %v1827_v36 }
  0x19   :  { %v2596_v41 = vld [vmem:[#allocation6 + $0xc4] sm:$0xf0]  ;;  %v2595_v42 = vld [vmem:[#allocation6 + $0xc4] sm:$0xf]  ;;  %v1893_v43 = vld [vmem:[#allocation6 + $0xc8] sm:$0xf0]  ;;  %v1832_v45 = vor.u32 %v2579_v38, %v1829_v39 }
  0x1a   :  { %851 = vmatpush.bf16.xpose.msra.mxu0 %v1844_v20  ;;  %v1892_v46 = vor.u32 %v2596_v41, %v1891_v40  ;;  %v1896_v47 = vor.u32 %v2595_v42, %v1893_v43  ;;  %v1819_v48 = vld [vmem:[#allocation6 + $0x30] sm:$0xf]  ;;  %v2578_v49 = vld [vmem:[#allocation6 + $0x34] sm:$0xf0]  ;;  %v2577_v50 = vld [vmem:[#allocation6 + $0x34] sm:$0xf] }
  0x1b   :  { %865 = vmatpush.bf16.xpose.msra.mxu1 %v1848_v21  ;;  %v1821_v51 = vld [vmem:[#allocation6 + $0x38] sm:$0xf0]  ;;  %v1883_v52 = vld [vmem:[#allocation6 + $0xb0] sm:$0xf]  ;;  %v2594_v53 = vld [vmem:[#allocation6 + $0xb4] sm:$0xf0]  ;;  %v1820_v56 = vor.u32 %v2578_v49, %v1819_v48 }
  0x1c   :  { %879 = vmatpush.bf16.xpose.msra.mxu2 %v1908_v22  ;;  %893 = vmatpush.bf16.xpose.msra.mxu3 %v1912_v23  ;;  %v2593_v54 = vld [vmem:[#allocation6 + $0xb4] sm:$0xf]  ;;  %v1885_v55 = vld [vmem:[#allocation6 + $0xb8] sm:$0xf0]  ;;  %v1824_v57 = vor.u32 %v2577_v50, %v1821_v51  ;;  %v1884_v58 = vor.u32 %v2594_v53, %v1883_v52  ;;  %v1811_v60 = vld [vmem:[#allocation6 + $0x20] sm:$0xf] }
  0x1d   :  { %v1888_v59 = vor.u32 %v2593_v54, %v1885_v55  ;;  %v2576_v61 = vld [vmem:[#allocation6 + $0x24] sm:$0xf0]  ;;  %v2575_v62 = vld [vmem:[#allocation6 + $0x24] sm:$0xf]  ;;  %v1813_v63 = vld [vmem:[#allocation6 + $0x28] sm:$0xf0] }
  0x1e   :  { %v1875_v0 = vld [vmem:[#allocation6 + $0xa0] sm:$0xf]  ;;  %v2592_v1 = vld [vmem:[#allocation6 + $0xa4] sm:$0xf0]  ;;  %v2591_v2 = vld [vmem:[#allocation6 + $0xa4] sm:$0xf]  ;;  %v1812_v4 = vor.u32 %v2576_v61, %v1811_v60  ;;  %v1816_v5 = vor.u32 %v2575_v62, %v1813_v63 }
  0x1f   :  { %v1877_v3 = vld [vmem:[#allocation6 + $0xa8] sm:$0xf0]  ;;  %v1876_v6 = vor.u32 %v2592_v1, %v1875_v0  ;;  %v1803_v8 = vld [vmem:[#allocation6 + $0x10] sm:$0xf]  ;;  %v2574_v9 = vld [vmem:[#allocation6 + $0x14] sm:$0xf0] }
  0x20   :  { %v1880_v7 = vor.u32 %v2591_v2, %v1877_v3  ;;  %v2573_v10 = vld [vmem:[#allocation6 + $0x14] sm:$0xf]  ;;  %v1805_v11 = vld [vmem:[#allocation6 + $0x18] sm:$0xf0]  ;;  %v1867_v12 = vld [vmem:[#allocation6 + $0x90] sm:$0xf]  ;;  %v1804_v16 = vor.u32 %v2574_v9, %v1803_v8 }
  0x21   :  { %v2590_v13 = vld [vmem:[#allocation6 + $0x94] sm:$0xf0]  ;;  %v2589_v14 = vld [vmem:[#allocation6 + $0x94] sm:$0xf]  ;;  %v1869_v15 = vld [vmem:[#allocation6 + $0x98] sm:$0xf0]  ;;  %v1808_v17 = vor.u32 %v2573_v10, %v1805_v11 }
  0x22   :  { %852 = vmatpush.bf16.xpose.msra.mxu0 %v1836_v32  ;;  %v1868_v18 = vor.u32 %v2590_v13, %v1867_v12  ;;  %v1872_v19 = vor.u32 %v2589_v14, %v1869_v15  ;;  %v1795_v20 = vld [vmem:[#allocation6] sm:$0xf]  ;;  %v2572_v21 = vld [vmem:[#allocation6 + $0x4] sm:$0xf0]  ;;  %v2571_v22 = vld [vmem:[#allocation6 + $0x4] sm:$0xf] }
  0x23   :  { %866 = vmatpush.bf16.xpose.msra.mxu1 %v1840_v33  ;;  %v1797_v23 = vld [vmem:[#allocation6 + $0x8] sm:$0xf0]  ;;  %v1859_v24 = vld [vmem:[#allocation6 + $0x80] sm:$0xf]  ;;  %v2588_v25 = vld [vmem:[#allocation6 + $0x84] sm:$0xf0]  ;;  %v1796_v31 = vor.u32 %v2572_v21, %v1795_v20 }
  0x24   :  { %880 = vmatpush.bf16.xpose.msra.mxu2 %v1900_v34  ;;  %894 = vmatpush.bf16.xpose.msra.mxu3 %v1904_v35  ;;  %v2587_v26 = vld [vmem:[#allocation6 + $0x84] sm:$0xf]  ;;  %v1861_v27 = vld [vmem:[#allocation6 + $0x88] sm:$0xf0]  ;;  %v1979_v28 = vld [vmem:[#allocation6 + $0x170] sm:$0xf]  ;;  %v1800_v35 = vor.u32 %v2571_v22, %v1797_v23  ;;  %v1860_v36 = vor.u32 %v2588_v25, %v1859_v24 }
  0x25   :  { %v2618_v29 = vld [vmem:[#allocation6 + $0x174] sm:$0xf0]  ;;  %v2617_v30 = vld [vmem:[#allocation6 + $0x174] sm:$0xf]  ;;  %v1981_v32 = vld [vmem:[#allocation6 + $0x178] sm:$0xf0]  ;;  %v1864_v39 = vor.u32 %v2587_v26, %v1861_v27 }
  0x26   :  { %v2043_v33 = vld [vmem:[#allocation6 + $0x1f0] sm:$0xf]  ;;  %v2634_v34 = vld [vmem:[#allocation6 + $0x1f4] sm:$0xf0]  ;;  %v2633_v37 = vld [vmem:[#allocation6 + $0x1f4] sm:$0xf]  ;;  %v1980_v40 = vor.u32 %v2618_v29, %v1979_v28  ;;  %v1984_v41 = vor.u32 %v2617_v30, %v1981_v32 }
  0x27   :  { %v2045_v38 = vld [vmem:[#allocation6 + $0x1f8] sm:$0xf0]  ;;  %v2044_v42 = vor.u32 %v2634_v34, %v2043_v33  ;;  %v1971_v48 = vld [vmem:[#allocation6 + $0x160] sm:$0xf]  ;;  %v2616_v49 = vld [vmem:[#allocation6 + $0x164] sm:$0xf0] }
  0x28   :  { %v2048_v43 = vor.u32 %v2633_v37, %v2045_v38  ;;  %v2615_v50 = vld [vmem:[#allocation6 + $0x164] sm:$0xf]  ;;  %v1973_v51 = vld [vmem:[#allocation6 + $0x168] sm:$0xf0]  ;;  %v2035_v52 = vld [vmem:[#allocation6 + $0x1e0] sm:$0xf] }
  0x29   :  { %v2632_v53 = vld [vmem:[#allocation6 + $0x1e4] sm:$0xf0]  ;;  %v2631_v55 = vld [vmem:[#allocation6 + $0x1e4] sm:$0xf]  ;;  %v1963_v62 = vld [vmem:[#allocation6 + $0x150] sm:$0xf] }
  0x2a   :  { %853 = vmatpush.bf16.xpose.msra.mxu0 %v1828_v44  ;;  %v1787_v44 = vld [vmem:[#allocation3] sm:$0xf]  ;;  %v2036_v60 = vor.u32 %v2632_v53, %v2035_v52  ;;  %v2614_v63 = vld [vmem:[#allocation6 + $0x154] sm:$0xf0]  ;;  %v2613_v0 = vld [vmem:[#allocation6 + $0x154] sm:$0xf] }
  0x2b   :  { %867 = vmatpush.bf16.xpose.msra.mxu1 %v1832_v45  ;;  %v2570_v45 = vld [vmem:[#allocation3 + $0x4] sm:$0xf0]  ;;  %v1965_v1 = vld [vmem:[#allocation6 + $0x158] sm:$0xf0]  ;;  %v2027_v2 = vld [vmem:[#allocation6 + $0x1d0] sm:$0xf] }
  0x2c   :  { %881 = vmatpush.bf16.xpose.msra.mxu2 %v1892_v46  ;;  %895 = vmatpush.bf16.xpose.msra.mxu3 %v1896_v47  ;;  %v2569_v46 = vld [vmem:[#allocation3 + $0x4] sm:$0xf]  ;;  %v1789_v47 = vld [vmem:[#allocation3 + $0x8] sm:$0xf0]  ;;  %v2948_v54 = vor.u32 %v2570_v45, %v1787_v44  ;;  %v2630_v3 = vld [vmem:[#allocation6 + $0x1d4] sm:$0xf0] }
  0x2d   :  { %v2028_v8 = vor.u32 %v2630_v3, %v2027_v2  ;;  %v1955_v10 = vld [vmem:[#allocation6 + $0x140] sm:$0xf]  ;;  %v2612_v11 = vld [vmem:[#allocation6 + $0x144] sm:$0xf0]  ;;  %v2611_v12 = vld [vmem:[#allocation6 + $0x144] sm:$0xf] }
  0x2e   :  { %v1957_v13 = vld [vmem:[#allocation6 + $0x148] sm:$0xf0]  ;;  %v2019_v14 = vld [vmem:[#allocation6 + $0x1c0] sm:$0xf]  ;;  %v2628_v15 = vld [vmem:[#allocation6 + $0x1c4] sm:$0xf0] }
  0x2f   :  { %v2020_v20 = vor.u32 %v2628_v15, %v2019_v14  ;;  %v1947_v22 = vld [vmem:[#allocation6 + $0x130] sm:$0xf]  ;;  %v2610_v23 = vld [vmem:[#allocation6 + $0x134] sm:$0xf0]  ;;  %v2609_v24 = vld [vmem:[#allocation6 + $0x134] sm:$0xf] }
  0x30   :  { %v1949_v25 = vld [vmem:[#allocation6 + $0x138] sm:$0xf0]  ;;  %v2011_v26 = vld [vmem:[#allocation6 + $0x1b0] sm:$0xf]  ;;  %v2626_v27 = vld [vmem:[#allocation6 + $0x1b4] sm:$0xf0]  ;;  %v1948_v30 = vor.u32 %v2610_v23, %v1947_v22 }
  0x31   :  { %v2625_v28 = vld [vmem:[#allocation6 + $0x1b4] sm:$0xf]  ;;  %v2013_v29 = vld [vmem:[#allocation6 + $0x1b8] sm:$0xf0]  ;;  %v2012_v32 = vor.u32 %v2626_v27, %v2011_v26  ;;  %v1939_v34 = vld [vmem:[#allocation6 + $0x120] sm:$0xf] }
  0x32   :  { %854 = vmatpush.bf16.xpose.msra.mxu0 %v1820_v56  ;;  %v2037_v56 = vld [vmem:[#allocation6 + $0x1e8] sm:$0xf0]  ;;  %v2016_v33 = vor.u32 %v2625_v28, %v2013_v29  ;;  %v2003_v38 = vld [vmem:[#allocation6 + $0x1a0] sm:$0xf]  ;;  %v2621_v52 = vld [vmem:[#allocation6 + $0x194] sm:$0xf] }
  0x33   :  { %868 = vmatpush.bf16.xpose.msra.mxu1 %v1824_v57  ;;  %v2950_v57 = vor.u32 %v2569_v46, %v1789_v47  ;;  %v2040_v61 = vor.u32 %v2631_v55, %v2037_v56  ;;  %v1941_v37 = vld [vmem:[#allocation6 + $0x128] sm:$0xf0]  ;;  %v1931_v46 = vld [vmem:[#allocation6 + $0x110] sm:$0xf]  ;;  %v2606_v47 = vld [vmem:[#allocation6 + $0x114] sm:$0xf0] }
  0x34   :  { %882 = vmatpush.bf16.xpose.msra.mxu2 %v1884_v58  ;;  %896 = vmatpush.bf16.xpose.msra.mxu3 %v1888_v59  ;;  %v1972_v58 = vor.u32 %v2616_v49, %v1971_v48  ;;  %v1976_v59 = vor.u32 %v2615_v50, %v1973_v51  ;;  %v2605_v48 = vld [vmem:[#allocation6 + $0x114] sm:$0xf]  ;;  %v1933_v49 = vld [vmem:[#allocation6 + $0x118] sm:$0xf0]  ;;  %v1995_v50 = vld [vmem:[#allocation6 + $0x190] sm:$0xf]  ;;  %v1932_v55 = vor.u32 %v2606_v47, %v1931_v46 }
  0x35   :  { %v2622_v51 = vld [vmem:[#allocation6 + $0x194] sm:$0xf0]  ;;  %v1997_v53 = vld [vmem:[#allocation6 + $0x198] sm:$0xf0]  ;;  %v1936_v56 = vor.u32 %v2605_v48, %v1933_v49  ;;  %v2619_v2 = vld [vmem:[#allocation6 + $0x184] sm:$0xf] }
  0x36   :  { %v1989_v3 = vld [vmem:[#allocation6 + $0x188] sm:$0xf0]  ;;  %v2173_v14 = vld [vmem:[#allocation6 + $0x2f8] sm:$0xf0]  ;;  %v2647_v22 = vld [vmem:[#allocation6 + $0x264] sm:$0xf] }
  0x37   :  { %v1992_v15 = vor.u32 %v2619_v2, %v1989_v3  ;;  %v2101_v23 = vld [vmem:[#allocation6 + $0x268] sm:$0xf0]  ;;  %v2663_v26 = vld [vmem:[#allocation6 + $0x2e4] sm:$0xf]  ;;  %v2147_v48 = vld [vmem:[#allocation6 + $0x2c0] sm:$0xf] }
  0x38   :  { %v2165_v27 = vld [vmem:[#allocation6 + $0x2e8] sm:$0xf0]  ;;  %v2104_v29 = vor.u32 %v2647_v22, %v2101_v23  ;;  %v2643_v46 = vld [vmem:[#allocation6 + $0x244] sm:$0xf]  ;;  %v2660_v49 = vld [vmem:[#allocation6 + $0x2c4] sm:$0xf0] }
  0x39   :  { %v2085_v47 = vld [vmem:[#allocation6 + $0x248] sm:$0xf0]  ;;  %v2123_v22 = vld [vmem:[#allocation6 + $0x290] sm:$0xf]  ;;  %v2654_v23 = vld [vmem:[#allocation6 + $0x294] sm:$0xf0] }
  0x3a   :  { %855 = vmatpush.bf16.xpose.msra.mxu0 %v1812_v4  ;;  %v2629_v4 = vld [vmem:[#allocation6 + $0x1d4] sm:$0xf]  ;;  %s2912_s2 = smov [#allocation9]   ;;  %s1771_s5 = sshll.u32 %s3217_s3, 4  ;;  %s1772_s5 = int_to_ptr.hbm [resolvable:$true] %s1771_s5 }
  0x3b   :  { %869 = vmatpush.bf16.xpose.msra.mxu1 %v1816_v5  ;;  %v2029_v5 = vld [vmem:[#allocation6 + $0x1d8] sm:$0xf0]  ;;  %s1769_s29 = sshll.u32 %s2912_s2, 4  ;;  %s1770_s29 = int_to_ptr.vmem [resolvable:$true] %s1769_s29 }
  0x3c   :  { %883 = vmatpush.bf16.xpose.msra.mxu2 %v1876_v6  ;;  %897 = vmatpush.bf16.xpose.msra.mxu3 %v1880_v7  ;;  %v1964_v6 = vor.u32 %v2614_v63, %v1963_v62  ;;  %v1968_v7 = vor.u32 %v2613_v0, %v1965_v1  ;;  %v2032_v9 = vor.u32 %v2629_v4, %v2029_v5  ;;  %v2603_v62 = vld [vmem:[#allocation6 + $0x104] sm:$0xf]  ;;  %v1925_v63 = vld [vmem:[#allocation6 + $0x108] sm:$0xf0]  ;;  %v1987_v0 = vld [vmem:[#allocation6 + $0x180] sm:$0xf] }
  0x3d   :  { %v2620_v1 = vld [vmem:[#allocation6 + $0x184] sm:$0xf0]  ;;  %v2107_v4 = vld [vmem:[#allocation6 + $0x270] sm:$0xf]  ;;  %v2650_v5 = vld [vmem:[#allocation6 + $0x274] sm:$0xf0] }
  0x42   :  { %856 = vmatpush.bf16.xpose.msra.mxu0 %v1804_v16  ;;  %v2627_v16 = vld [vmem:[#allocation6 + $0x1c4] sm:$0xf] }
  0x43   :  { %870 = vmatpush.bf16.xpose.msra.mxu1 %v1808_v17  ;;  %v2021_v17 = vld [vmem:[#allocation6 + $0x1c8] sm:$0xf0] }
  0x44   :  { %884 = vmatpush.bf16.xpose.msra.mxu2 %v1868_v18  ;;  %898 = vmatpush.bf16.xpose.msra.mxu3 %v1872_v19  ;;  %v1956_v18 = vor.u32 %v2612_v11, %v1955_v10  ;;  %v1960_v19 = vor.u32 %v2611_v12, %v1957_v13  ;;  %v2024_v21 = vor.u32 %v2627_v16, %v2021_v17  ;;  %v2666_v10 = vld [vmem:[#allocation6 + $0x2f4] sm:$0xf0]  ;;  %v2665_v13 = vld [vmem:[#allocation6 + $0x2f4] sm:$0xf] }
  0x45   :  { %v1928_v11 = vor.u32 %v2603_v62, %v1925_v63  ;;  %v1988_v12 = vor.u32 %v2620_v1, %v1987_v0  ;;  %v2108_v16 = vor.u32 %v2650_v5, %v2107_v4  ;;  %v2139_v62 = vld [vmem:[#allocation6 + $0x2b0] sm:$0xf]  ;;  %v2658_v63 = vld [vmem:[#allocation6 + $0x2b4] sm:$0xf0]  ;;  %v2657_v0 = vld [vmem:[#allocation6 + $0x2b4] sm:$0xf] }
  0x46   :  { %v2141_v1 = vld [vmem:[#allocation6 + $0x2b8] sm:$0xf0]  ;;  %v2140_v4 = vor.u32 %v2658_v63, %v2139_v62  ;;  %v2695_v62 = vld [vmem:[#allocation6 + $0x3e4] sm:$0xf]  ;;  %v2293_v63 = vld [vmem:[#allocation6 + $0x3e8] sm:$0xf0] }
  0x47   :  { %v2144_v5 = vor.u32 %v2657_v0, %v2141_v1 }
  0x4a   :  { %857 = vmatpush.bf16.xpose.msra.mxu0 %v1796_v31  ;;  %v1952_v31 = vor.u32 %v2609_v24, %v1949_v25  ;;  %v2163_v24 = vld [vmem:[#allocation6 + $0x2e0] sm:$0xf]  ;;  %v2664_v25 = vld [vmem:[#allocation6 + $0x2e4] sm:$0xf0] }
  0x4b   :  { %871 = vmatpush.bf16.xpose.msra.mxu1 %v1800_v35  ;;  %v2608_v35 = vld [vmem:[#allocation6 + $0x124] sm:$0xf0] }
  0x4c   :  { %885 = vmatpush.bf16.xpose.msra.mxu2 %v1860_v36  ;;  %899 = vmatpush.bf16.xpose.msra.mxu3 %v1864_v39  ;;  %v2607_v36 = vld [vmem:[#allocation6 + $0x124] sm:$0xf]  ;;  %v2624_v39 = vld [vmem:[#allocation6 + $0x1a4] sm:$0xf0] }
  0x4d   :  { %v2004_v44 = vor.u32 %v2624_v39, %v2003_v38  ;;  %v2661_v38 = vld [vmem:[#allocation6 + $0x2d4] sm:$0xf]  ;;  %v2157_v39 = vld [vmem:[#allocation6 + $0x2d8] sm:$0xf0] }
  0x51   :  { %858 = vmatmul.bf16.vlgmr.msra.gmra.mxu0 %v2948_v54 }
  0x52   :  { %906 = vmatpush.bf16.xpose.msrb.mxu0 %v1980_v40  ;;  %872 = vmatmul.bf16.vlgmr.msra.gmra.mxu1 %v2950_v57  ;;  %v2623_v40 = vld [vmem:[#allocation6 + $0x1a4] sm:$0xf] }
  0x53   :  { %920 = vmatpush.bf16.xpose.msrb.mxu1 %v1984_v41  ;;  %886 = vmatmul.bf16.vlgmr.msra.gmra.mxu2 %v2948_v54  ;;  %v2005_v41 = vld [vmem:[#allocation6 + $0x1a8] sm:$0xf0] }
  0x54   :  { %934 = vmatpush.bf16.xpose.msrb.mxu2 %v2044_v42  ;;  %948 = vmatpush.bf16.xpose.msrb.mxu3 %v2048_v43  ;;  %v1940_v42 = vor.u32 %v2608_v35, %v1939_v34  ;;  %v1944_v43 = vor.u32 %v2607_v36, %v1941_v37  ;;  %v2008_v45 = vor.u32 %v2623_v40, %v2005_v41  ;;  %v2645_v34 = vld [vmem:[#allocation6 + $0x254] sm:$0xf]  ;;  %v2093_v35 = vld [vmem:[#allocation6 + $0x258] sm:$0xf0]  ;;  %v2155_v36 = vld [vmem:[#allocation6 + $0x2d0] sm:$0xf] }
  0x55   :  { %900 = vmatmul.bf16.vlgmr.msra.gmra.mxu3 %v2950_v57  ;;  %v2662_v37 = vld [vmem:[#allocation6 + $0x2d4] sm:$0xf0]  ;;  %v2096_v41 = vor.u32 %v2645_v34, %v2093_v35  ;;  %v2115_v34 = vld [vmem:[#allocation6 + $0x280] sm:$0xf]  ;;  %v2652_v35 = vld [vmem:[#allocation6 + $0x284] sm:$0xf0] }
  0x5a   :  { %907 = vmatpush.bf16.xpose.msrb.mxu0 %v1972_v58  ;;  %v1996_v58 = vor.u32 %v2622_v51, %v1995_v50  ;;  %v2659_v50 = vld [vmem:[#allocation6 + $0x2c4] sm:$0xf]  ;;  %v2149_v51 = vld [vmem:[#allocation6 + $0x2c8] sm:$0xf0] }
  0x5b   :  { %921 = vmatpush.bf16.xpose.msrb.mxu1 %v1976_v59  ;;  %v2000_v59 = vor.u32 %v2621_v52, %v1997_v53  ;;  %v2088_v53 = vor.u32 %v2643_v46, %v2085_v47  ;;  %v2116_v46 = vor.u32 %v2652_v35, %v2115_v34  ;;  %v2697_v47 = vld [vmem:[#allocation6 + $0x3f4] sm:$0xf]  ;;  %v2269_v35 = vld [vmem:[#allocation6 + $0x3b8] sm:$0xf0] }
  0x5c   :  { %935 = vmatpush.bf16.xpose.msrb.mxu2 %v2036_v60  ;;  %949 = vmatpush.bf16.xpose.msrb.mxu3 %v2040_v61  ;;  %v1923_v60 = vld [vmem:[#allocation6 + $0x100] sm:$0xf]  ;;  %v2604_v61 = vld [vmem:[#allocation6 + $0x104] sm:$0xf0]  ;;  %v2689_v34 = vld [vmem:[#allocation6 + $0x3b4] sm:$0xf] }
  0x62   :  { %908 = vmatpush.bf16.xpose.msrb.mxu0 %v1964_v6  ;;  %v2649_v6 = vld [vmem:[#allocation6 + $0x274] sm:$0xf] }
  0x63   :  { %922 = vmatpush.bf16.xpose.msrb.mxu1 %v1968_v7  ;;  %v1924_v7 = vor.u32 %v2604_v61, %v1923_v60  ;;  %v2641_v60 = vld [vmem:[#allocation6 + $0x234] sm:$0xf]  ;;  %v2077_v61 = vld [vmem:[#allocation6 + $0x238] sm:$0xf0] }
  0x64   :  { %936 = vmatpush.bf16.xpose.msrb.mxu2 %v2028_v8  ;;  %950 = vmatpush.bf16.xpose.msrb.mxu3 %v2032_v9  ;;  %v2109_v8 = vld [vmem:[#allocation6 + $0x278] sm:$0xf0]  ;;  %v2171_v9 = vld [vmem:[#allocation6 + $0x2f0] sm:$0xf]  ;;  %v2080_v3 = vor.u32 %v2641_v60, %v2077_v61  ;;  %v2291_v60 = vld [vmem:[#allocation6 + $0x3e0] sm:$0xf] }
  0x65   :  { %v2112_v17 = vor.u32 %v2649_v6, %v2109_v8  ;;  %v2067_v6 = vld [vmem:[#allocation6 + $0x220] sm:$0xf]  ;;  %v2639_v8 = vld [vmem:[#allocation6 + $0x224] sm:$0xf]  ;;  %v2696_v61 = vld [vmem:[#allocation6 + $0x3e4] sm:$0xf0] }
  0x6a   :  { %909 = vmatpush.bf16.xpose.msrb.mxu0 %v1956_v18  ;;  %v2172_v18 = vor.u32 %v2666_v10, %v2171_v9  ;;  %v2069_v9 = vld [vmem:[#allocation6 + $0x228] sm:$0xf0]  ;;  %v2131_v10 = vld [vmem:[#allocation6 + $0x2a0] sm:$0xf] }
  0x6b   :  { %923 = vmatpush.bf16.xpose.msrb.mxu1 %v1960_v19  ;;  %v2176_v19 = vor.u32 %v2665_v13, %v2173_v14  ;;  %v2133_v13 = vld [vmem:[#allocation6 + $0x2a8] sm:$0xf0] }
  0x6c   :  { %937 = vmatpush.bf16.xpose.msrb.mxu2 %v2020_v20  ;;  %951 = vmatpush.bf16.xpose.msrb.mxu3 %v2024_v21  ;;  %v2099_v20 = vld [vmem:[#allocation6 + $0x260] sm:$0xf]  ;;  %v2648_v21 = vld [vmem:[#allocation6 + $0x264] sm:$0xf0] }
  0x6d   :  { %v2100_v28 = vor.u32 %v2648_v21, %v2099_v20  ;;  %v2637_v20 = vld [vmem:[#allocation6 + $0x214] sm:$0xf]  ;;  %v2061_v21 = vld [vmem:[#allocation6 + $0x218] sm:$0xf0] }
  0x72   :  { %910 = vmatpush.bf16.xpose.msrb.mxu0 %v1948_v30  ;;  %v2164_v30 = vor.u32 %v2664_v25, %v2163_v24  ;;  %v2653_v24 = vld [vmem:[#allocation6 + $0x294] sm:$0xf]  ;;  %v2125_v25 = vld [vmem:[#allocation6 + $0x298] sm:$0xf0] }
  0x73   :  { %924 = vmatpush.bf16.xpose.msrb.mxu1 %v1952_v31  ;;  %v2168_v31 = vor.u32 %v2663_v26, %v2165_v27  ;;  %v2064_v27 = vor.u32 %v2637_v20, %v2061_v21  ;;  %v2275_v20 = vld [vmem:[#allocation6 + $0x3c0] sm:$0xf]  ;;  %v2692_v21 = vld [vmem:[#allocation6 + $0x3c4] sm:$0xf0] }
  0x74   :  { %938 = vmatpush.bf16.xpose.msrb.mxu2 %v2012_v32  ;;  %952 = vmatpush.bf16.xpose.msrb.mxu3 %v2016_v33  ;;  %v2091_v32 = vld [vmem:[#allocation6 + $0x250] sm:$0xf]  ;;  %v2646_v33 = vld [vmem:[#allocation6 + $0x254] sm:$0xf0] }
  0x75   :  { %v2092_v40 = vor.u32 %v2646_v33, %v2091_v32  ;;  %v2635_v32 = vld [vmem:[#allocation6 + $0x204] sm:$0xf]  ;;  %v2053_v33 = vld [vmem:[#allocation6 + $0x208] sm:$0xf0] }
  0x7a   :  { %911 = vmatpush.bf16.xpose.msrb.mxu0 %v1940_v42  ;;  %v2156_v42 = vor.u32 %v2662_v37, %v2155_v36  ;;  %v2651_v36 = vld [vmem:[#allocation6 + $0x284] sm:$0xf]  ;;  %v2117_v37 = vld [vmem:[#allocation6 + $0x288] sm:$0xf0] }
  0x7b   :  { %925 = vmatpush.bf16.xpose.msrb.mxu1 %v1944_v43  ;;  %v2160_v43 = vor.u32 %v2661_v38, %v2157_v39  ;;  %v2235_v38 = vld [vmem:[#allocation6 + $0x370] sm:$0xf]  ;;  %v2682_v39 = vld [vmem:[#allocation6 + $0x374] sm:$0xf0] }
  0x7c   :  { %939 = vmatpush.bf16.xpose.msrb.mxu2 %v2004_v44  ;;  %953 = vmatpush.bf16.xpose.msrb.mxu3 %v2008_v45  ;;  %v2083_v44 = vld [vmem:[#allocation6 + $0x240] sm:$0xf]  ;;  %v2644_v45 = vld [vmem:[#allocation6 + $0x244] sm:$0xf0] }
  0x7d   :  { %v2084_v52 = vor.u32 %v2644_v45, %v2083_v44  ;;  %v2698_v44 = vld [vmem:[#allocation6 + $0x3f4] sm:$0xf0]  ;;  %v2056_v45 = vor.u32 %v2635_v32, %v2053_v33  ;;  %v2267_v32 = vld [vmem:[#allocation6 + $0x3b0] sm:$0xf] }
  0x7e   :  { %v2690_v33 = vld [vmem:[#allocation6 + $0x3b4] sm:$0xf0] }
  0x82   :  { %912 = vmatpush.bf16.xpose.msrb.mxu0 %v1932_v55  ;;  %v2148_v55 = vor.u32 %v2660_v49, %v2147_v48  ;;  %v2301_v48 = vld [vmem:[#allocation6 + $0x3f8] sm:$0xf0]  ;;  %v2120_v49 = vor.u32 %v2651_v36, %v2117_v37 }
  0x83   :  { %926 = vmatpush.bf16.xpose.msrb.mxu1 %v1936_v56  ;;  %v2152_v56 = vor.u32 %v2659_v50, %v2149_v51  ;;  %v2236_v50 = vor.u32 %v2682_v39, %v2235_v38  ;;  %v2268_v38 = vor.u32 %v2690_v33, %v2267_v32  ;;  %v2272_v39 = vor.u32 %v2689_v34, %v2269_v35  ;;  %v2397_v32 = vld [vmem:[#allocation8 + $0xb0] sm:$0xf0]  ;;  %v2728_v35 = vld [vmem:[#allocation8 + $0xec] sm:$0xf] }
  0x84   :  { %940 = vmatpush.bf16.xpose.msrb.mxu2 %v1996_v58  ;;  %954 = vmatpush.bf16.xpose.msrb.mxu3 %v2000_v59  ;;  %v2075_v58 = vld [vmem:[#allocation6 + $0x230] sm:$0xf]  ;;  %v2642_v59 = vld [vmem:[#allocation6 + $0x234] sm:$0xf0] }
  0x85   :  { %v2076_v2 = vor.u32 %v2642_v59, %v2075_v58  ;;  %v2679_v58 = vld [vmem:[#allocation6 + $0x364] sm:$0xf]  ;;  %v2229_v59 = vld [vmem:[#allocation6 + $0x368] sm:$0xf0] }
  0x86   :  { %v2232_v1 = vor.u32 %v2679_v58, %v2229_v59  ;;  %v2251_v58 = vld [vmem:[#allocation6 + $0x390] sm:$0xf]  ;;  %v2686_v59 = vld [vmem:[#allocation6 + $0x394] sm:$0xf0] }
  0x8a   :  { %913 = vmatpush.bf16.xpose.msrb.mxu0 %v1924_v7  ;;  %v2640_v7 = vld [vmem:[#allocation6 + $0x224] sm:$0xf0] }
  0x8b   :  { %927 = vmatpush.bf16.xpose.msrb.mxu1 %v1928_v11  ;;  %v2656_v11 = vld [vmem:[#allocation6 + $0x2a4] sm:$0xf0]  ;;  %v2068_v14 = vor.u32 %v2640_v7, %v2067_v6  ;;  %v2677_v6 = vld [vmem:[#allocation6 + $0x354] sm:$0xf]  ;;  %v2221_v7 = vld [vmem:[#allocation6 + $0x358] sm:$0xf0] }
  0x8c   :  { %941 = vmatpush.bf16.xpose.msrb.mxu2 %v1988_v12  ;;  %955 = vmatpush.bf16.xpose.msrb.mxu3 %v1992_v15  ;;  %v2655_v12 = vld [vmem:[#allocation6 + $0x2a4] sm:$0xf]  ;;  %v2072_v15 = vor.u32 %v2639_v8, %v2069_v9  ;;  %v2283_v8 = vld [vmem:[#allocation6 + $0x3d0] sm:$0xf]  ;;  %v2694_v9 = vld [vmem:[#allocation6 + $0x3d4] sm:$0xf0] }
  0x91   :  { %914 = vmatmul.bf16.vlgmr.msrb.gmra.mxu0 %v2948_v54 }
  0x92   :  { %962 = vmatpush.bf16.xpose.msra.mxu0 %v2108_v16  ;;  %928 = vmatmul.bf16.vlgmr.msrb.gmra.mxu1 %v2950_v57  ;;  %v2132_v16 = vor.u32 %v2656_v11, %v2131_v10  ;;  %v2693_v10 = vld [vmem:[#allocation6 + $0x3d4] sm:$0xf]  ;;  %v2285_v11 = vld [vmem:[#allocation6 + $0x3d8] sm:$0xf0] }
  0x93   :  { %976 = vmatpush.bf16.xpose.msra.mxu1 %v2112_v17  ;;  %942 = vmatmul.bf16.vlgmr.msrb.gmra.mxu2 %v2948_v54  ;;  %v2136_v17 = vor.u32 %v2655_v12, %v2133_v13  ;;  %v2224_v13 = vor.u32 %v2677_v6, %v2221_v7  ;;  %v2243_v6 = vld [vmem:[#allocation6 + $0x380] sm:$0xf]  ;;  %v2684_v7 = vld [vmem:[#allocation6 + $0x384] sm:$0xf0] }
  0x94   :  { %990 = vmatpush.bf16.xpose.msra.mxu2 %v2172_v18  ;;  %1004 = vmatpush.bf16.xpose.msra.mxu3 %v2176_v19  ;;  %v2059_v18 = vld [vmem:[#allocation6 + $0x210] sm:$0xf]  ;;  %v2638_v19 = vld [vmem:[#allocation6 + $0x214] sm:$0xf0] }
  0x95   :  { %956 = vmatmul.bf16.vlgmr.msrb.gmra.mxu3 %v2950_v57  ;;  %v2060_v26 = vor.u32 %v2638_v19, %v2059_v18  ;;  %v2675_v18 = vld [vmem:[#allocation6 + $0x344] sm:$0xf]  ;;  %v2213_v19 = vld [vmem:[#allocation6 + $0x348] sm:$0xf0] }
  0x9a   :  { %963 = vmatpush.bf16.xpose.msra.mxu0 %v2100_v28  ;;  %v2124_v28 = vor.u32 %v2654_v23, %v2123_v22  ;;  %v2691_v22 = vld [vmem:[#allocation6 + $0x3c4] sm:$0xf]  ;;  %v2277_v23 = vld [vmem:[#allocation6 + $0x3c8] sm:$0xf0] }
  0x9b   :  { %977 = vmatpush.bf16.xpose.msra.mxu1 %v2104_v29  ;;  %v2128_v29 = vor.u32 %v2653_v24, %v2125_v25  ;;  %v2216_v25 = vor.u32 %v2675_v18, %v2213_v19 }
  0x9c   :  { %991 = vmatpush.bf16.xpose.msra.mxu2 %v2164_v30  ;;  %1005 = vmatpush.bf16.xpose.msra.mxu3 %v2168_v31  ;;  %v2051_v30 = vld [vmem:[#allocation6 + $0x200] sm:$0xf]  ;;  %v2636_v31 = vld [vmem:[#allocation6 + $0x204] sm:$0xf0] }
  0xa2   :  { %964 = vmatpush.bf16.xpose.msra.mxu0 %v2092_v40  ;;  %v2681_v40 = vld [vmem:[#allocation6 + $0x374] sm:$0xf] }
  0xa3   :  { %978 = vmatpush.bf16.xpose.msra.mxu1 %v2096_v41  ;;  %v2052_v41 = vor.u32 %v2636_v31, %v2051_v30  ;;  %v2673_v30 = vld [vmem:[#allocation6 + $0x334] sm:$0xf]  ;;  %v2205_v31 = vld [vmem:[#allocation6 + $0x338] sm:$0xf0] }
  0xa4   :  { %992 = vmatpush.bf16.xpose.msra.mxu2 %v2156_v42  ;;  %1006 = vmatpush.bf16.xpose.msra.mxu3 %v2160_v43  ;;  %v2237_v42 = vld [vmem:[#allocation6 + $0x378] sm:$0xf0]  ;;  %v2299_v43 = vld [vmem:[#allocation6 + $0x3f0] sm:$0xf]  ;;  %v2208_v37 = vor.u32 %v2673_v30, %v2205_v31  ;;  %v2719_v31 = vld [vmem:[#allocation8 + $0xa4] sm:$0xf] }
  0xa5   :  { %v2240_v51 = vor.u32 %v2681_v40, %v2237_v42  ;;  %v2195_v40 = vld [vmem:[#allocation6 + $0x320] sm:$0xf]  ;;  %v2671_v42 = vld [vmem:[#allocation6 + $0x324] sm:$0xf]  ;;  %v2400_v34 = vor.u32 %v2719_v31, %v2397_v32  ;;  %v2333_v32 = vld [vmem:[#allocation8 + $0x30] sm:$0xf0] }
  0xa6   :  { %v2703_v31 = vld [vmem:[#allocation8 + $0x24] sm:$0xf] }
  0xaa   :  { %965 = vmatpush.bf16.xpose.msra.mxu0 %v2084_v52  ;;  %v2300_v52 = vor.u32 %v2698_v44, %v2299_v43  ;;  %v2197_v43 = vld [vmem:[#allocation6 + $0x328] sm:$0xf0]  ;;  %v2259_v44 = vld [vmem:[#allocation6 + $0x3a0] sm:$0xf] }
  0xab   :  { %979 = vmatpush.bf16.xpose.msra.mxu1 %v2088_v53  ;;  %v2304_v53 = vor.u32 %v2697_v47, %v2301_v48  ;;  %v2261_v47 = vld [vmem:[#allocation6 + $0x3a8] sm:$0xf0] }
  0xac   :  { %993 = vmatpush.bf16.xpose.msra.mxu2 %v2148_v55  ;;  %1007 = vmatpush.bf16.xpose.msra.mxu3 %v2152_v56  ;;  %v2227_v55 = vld [vmem:[#allocation6 + $0x360] sm:$0xf]  ;;  %v2680_v56 = vld [vmem:[#allocation6 + $0x364] sm:$0xf0] }
  0xad   :  { %v2228_v0 = vor.u32 %v2680_v56, %v2227_v55  ;;  %v2669_v55 = vld [vmem:[#allocation6 + $0x314] sm:$0xf]  ;;  %v2189_v56 = vld [vmem:[#allocation6 + $0x318] sm:$0xf0] }
  0xb2   :  { %966 = vmatpush.bf16.xpose.msra.mxu0 %v2076_v2  ;;  %v2292_v2 = vor.u32 %v2696_v61, %v2291_v60  ;;  %v2685_v60 = vld [vmem:[#allocation6 + $0x394] sm:$0xf]  ;;  %v2253_v61 = vld [vmem:[#allocation6 + $0x398] sm:$0xf0] }
  0xb3   :  { %980 = vmatpush.bf16.xpose.msra.mxu1 %v2080_v3  ;;  %v2296_v3 = vor.u32 %v2695_v62, %v2293_v63  ;;  %v2192_v63 = vor.u32 %v2669_v55, %v2189_v56  ;;  %v2403_v55 = vld [vmem:[#allocation8 + $0xa8] sm:$0xf]  ;;  %v2711_v56 = vld [vmem:[#allocation8 + $0x64] sm:$0xf] }
  0xb4   :  { %994 = vmatpush.bf16.xpose.msra.mxu2 %v2140_v4  ;;  %1008 = vmatpush.bf16.xpose.msra.mxu3 %v2144_v5  ;;  %v2219_v4 = vld [vmem:[#allocation6 + $0x350] sm:$0xf]  ;;  %v2678_v5 = vld [vmem:[#allocation6 + $0x354] sm:$0xf0] }
  0xb5   :  { %v2220_v12 = vor.u32 %v2678_v5, %v2219_v4  ;;  %v2667_v4 = vld [vmem:[#allocation6 + $0x304] sm:$0xf]  ;;  %v2181_v5 = vld [vmem:[#allocation6 + $0x308] sm:$0xf0] }
  0xba   :  { %967 = vmatpush.bf16.xpose.msra.mxu0 %v2068_v14  ;;  %v2284_v14 = vor.u32 %v2694_v9, %v2283_v8  ;;  %v2683_v8 = vld [vmem:[#allocation6 + $0x384] sm:$0xf]  ;;  %v2245_v9 = vld [vmem:[#allocation6 + $0x388] sm:$0xf0] }
  0xbb   :  { %981 = vmatpush.bf16.xpose.msra.mxu1 %v2072_v15  ;;  %v2288_v15 = vor.u32 %v2693_v10, %v2285_v11  ;;  %v2427_v10 = vld [vmem:[#allocation8 + $0xe0] sm:$0xf]  ;;  %v2729_v11 = vld [vmem:[#allocation8 + $0xec] sm:$0xf0] }
  0xbc   :  { %995 = vmatpush.bf16.xpose.msra.mxu2 %v2132_v16  ;;  %1009 = vmatpush.bf16.xpose.msra.mxu3 %v2136_v17  ;;  %v2211_v16 = vld [vmem:[#allocation6 + $0x340] sm:$0xf]  ;;  %v2676_v17 = vld [vmem:[#allocation6 + $0x344] sm:$0xf0]  ;;  %v2428_v18 = vor.u32 %v2729_v11, %v2427_v10  ;;  %v2709_v10 = vld [vmem:[#allocation8 + $0x4c] sm:$0xf0] }
  0xbd   :  { %v2212_v24 = vor.u32 %v2676_v17, %v2211_v16  ;;  %v2244_v16 = vor.u32 %v2684_v7, %v2243_v6  ;;  %v2248_v17 = vor.u32 %v2683_v8, %v2245_v9  ;;  %v2387_v6 = vld [vmem:[#allocation8 + $0x88] sm:$0xf]  ;;  %v2718_v7 = vld [vmem:[#allocation8 + $0x94] sm:$0xf0]  ;;  %v2347_v9 = vld [vmem:[#allocation8 + $0x40] sm:$0xf] }
  0xbe   :  { %v2388_v11 = vor.u32 %v2718_v7, %v2387_v6  ;;  %v2706_v6 = vld [vmem:[#allocation8 + $0x34] sm:$0xf0] }
  0xc2   :  { %968 = vmatpush.bf16.xpose.msra.mxu0 %v2060_v26  ;;  %v2276_v26 = vor.u32 %v2692_v21, %v2275_v20  ;;  %v2411_v20 = vld [vmem:[#allocation8 + $0xc0] sm:$0xf]  ;;  %v2725_v21 = vld [vmem:[#allocation8 + $0xcc] sm:$0xf0] }
  0xc3   :  { %982 = vmatpush.bf16.xpose.msra.mxu1 %v2064_v27  ;;  %v2280_v27 = vor.u32 %v2691_v22, %v2277_v23  ;;  %v2723_v22 = vld [vmem:[#allocation8 + $0xc4] sm:$0xf]  ;;  %v2413_v23 = vld [vmem:[#allocation8 + $0xd0] sm:$0xf0] }
  0xc4   :  { %996 = vmatpush.bf16.xpose.msra.mxu2 %v2124_v28  ;;  %1010 = vmatpush.bf16.xpose.msra.mxu3 %v2128_v29  ;;  %v2203_v28 = vld [vmem:[#allocation6 + $0x330] sm:$0xf]  ;;  %v2674_v29 = vld [vmem:[#allocation6 + $0x334] sm:$0xf0] }
  0xc5   :  { %v2204_v36 = vor.u32 %v2674_v29, %v2203_v28  ;;  %v2395_v28 = vld [vmem:[#allocation8 + $0xa0] sm:$0xf]  ;;  %v2721_v29 = vld [vmem:[#allocation8 + $0xac] sm:$0xf0] }
  0xc6   :  { %v2396_v33 = vor.u32 %v2721_v29, %v2395_v28  ;;  %v2331_v28 = vld [vmem:[#allocation8 + $0x20] sm:$0xf]  ;;  %v2705_v29 = vld [vmem:[#allocation8 + $0x2c] sm:$0xf0] }
  0xca   :  { %969 = vmatpush.bf16.xpose.msra.mxu0 %v2052_v41  ;;  %v2672_v41 = vld [vmem:[#allocation6 + $0x324] sm:$0xf0] }
  0xcb   :  { %983 = vmatpush.bf16.xpose.msra.mxu1 %v2056_v45  ;;  %v2688_v45 = vld [vmem:[#allocation6 + $0x3a4] sm:$0xf0]  ;;  %v2196_v48 = vor.u32 %v2672_v41, %v2195_v40  ;;  %v2379_v40 = vld [vmem:[#allocation8 + $0x80] sm:$0xf]  ;;  %v2717_v41 = vld [vmem:[#allocation8 + $0x8c] sm:$0xf0] }
  0xcc   :  { %997 = vmatpush.bf16.xpose.msra.mxu2 %v2116_v46  ;;  %1011 = vmatpush.bf16.xpose.msra.mxu3 %v2120_v49  ;;  %v2687_v46 = vld [vmem:[#allocation6 + $0x3a4] sm:$0xf]  ;;  %v2200_v49 = vor.u32 %v2671_v42, %v2197_v43 }
  0xcd   :  { %v2715_v43 = vld [vmem:[#allocation8 + $0x84] sm:$0xf] }
  0xd1   :  { %970 = vmatmul.bf16.vlgmr.msra.gmra.mxu0 %v2948_v54 }
  0xd2   :  { %1018 = vmatpush.bf16.xpose.msrb.mxu0 %v2236_v50  ;;  %984 = vmatmul.bf16.vlgmr.msra.gmra.mxu1 %v2950_v57  ;;  %v2260_v50 = vor.u32 %v2688_v45, %v2259_v44  ;;  %v2381_v44 = vld [vmem:[#allocation8 + $0x90] sm:$0xf0]  ;;  %v2380_v45 = vor.u32 %v2717_v41, %v2379_v40  ;;  %v2315_v40 = vld [vmem:[#allocation8] sm:$0xf]  ;;  %v2701_v41 = vld [vmem:[#allocation8 + $0xc] sm:$0xf0] }
  0xd3   :  { %1032 = vmatpush.bf16.xpose.msrb.mxu1 %v2240_v51  ;;  %998 = vmatmul.bf16.vlgmr.msra.gmra.mxu2 %v2948_v54  ;;  %v2264_v51 = vor.u32 %v2687_v46, %v2261_v47  ;;  %v2384_v46 = vor.u32 %v2715_v43, %v2381_v44  ;;  %v2724_v47 = vld [vmem:[#allocation8 + $0xcc] sm:$0xf]  ;;  %v2355_v43 = vld [vmem:[#allocation8 + $0x48] sm:$0xf]  ;;  %v2710_v44 = vld [vmem:[#allocation8 + $0x54] sm:$0xf0] }
  0xd4   :  { %1046 = vmatpush.bf16.xpose.msrb.mxu2 %v2300_v52  ;;  %1060 = vmatpush.bf16.xpose.msrb.mxu3 %v2304_v53  ;;  %v2187_v52 = vld [vmem:[#allocation6 + $0x310] sm:$0xf]  ;;  %v2670_v53 = vld [vmem:[#allocation6 + $0x314] sm:$0xf0] }
  0xd5   :  { %1012 = vmatmul.bf16.vlgmr.msra.gmra.mxu3 %v2950_v57  ;;  %v2188_v62 = vor.u32 %v2670_v53, %v2187_v52  ;;  %v2363_v52 = vld [vmem:[#allocation8 + $0x60] sm:$0xf]  ;;  %v2713_v53 = vld [vmem:[#allocation8 + $0x6c] sm:$0xf0] }
  0xda   :  { %1019 = vmatpush.bf16.xpose.msrb.mxu0 %v2228_v0  ;;  %v2252_v0 = vor.u32 %v2686_v59, %v2251_v58  ;;  %v2365_v58 = vld [vmem:[#allocation8 + $0x70] sm:$0xf0]  ;;  %v2722_v59 = vld [vmem:[#allocation8 + $0xb4] sm:$0xf0] }
  0xdb   :  { %1033 = vmatpush.bf16.xpose.msrb.mxu1 %v2232_v1  ;;  %v2256_v1 = vor.u32 %v2685_v60, %v2253_v61 }
  0xdc   :  { %1047 = vmatpush.bf16.xpose.msrb.mxu2 %v2292_v2  ;;  %1061 = vmatpush.bf16.xpose.msrb.mxu3 %v2296_v3  ;;  %v2179_v2 = vld [vmem:[#allocation6 + $0x300] sm:$0xf]  ;;  %v2668_v3 = vld [vmem:[#allocation6 + $0x304] sm:$0xf0] }
  0xe2   :  { %1020 = vmatpush.bf16.xpose.msrb.mxu0 %v2220_v12  ;;  %v2180_v12 = vor.u32 %v2668_v3, %v2179_v2  ;;  %v2720_v2 = vld [vmem:[#allocation8 + $0xac] sm:$0xf] }
  0xe3   :  { %1034 = vmatpush.bf16.xpose.msrb.mxu1 %v2224_v13  ;;  %v2727_v13 = vld [vmem:[#allocation8 + $0xe4] sm:$0xf] }
  0xe4   :  { %1048 = vmatpush.bf16.xpose.msrb.mxu2 %v2284_v14  ;;  %1062 = vmatpush.bf16.xpose.msrb.mxu3 %v2288_v15  ;;  %v2429_v14 = vld [vmem:[#allocation8 + $0xf0] sm:$0xf0]  ;;  %v2184_v15 = vor.u32 %v2667_v4, %v2181_v5  ;;  %v2405_v4 = vld [vmem:[#allocation8 + $0xb8] sm:$0xf0] }
  0xe5   :  { %v2432_v19 = vor.u32 %v2727_v13, %v2429_v14  ;;  %v2408_v5 = vor.u32 %v2720_v2, %v2405_v4 }
  0xea   :  { %1021 = vmatpush.bf16.xpose.msrb.mxu0 %v2212_v24  ;;  %v2412_v24 = vor.u32 %v2725_v21, %v2411_v20  ;;  %v2348_v20 = vor.u32 %v2709_v10, %v2347_v9  ;;  %v2539_v9 = vld [vmem:[#allocation8 + $0x1c0] sm:$0xf]  ;;  %v2757_v10 = vld [vmem:[#allocation8 + $0x1cc] sm:$0xf0] }
  0xeb   :  { %1035 = vmatpush.bf16.xpose.msrb.mxu1 %v2216_v25  ;;  %v2416_v25 = vor.u32 %v2723_v22, %v2413_v23 }
  0xec   :  { %1049 = vmatpush.bf16.xpose.msrb.mxu2 %v2276_v26  ;;  %1063 = vmatpush.bf16.xpose.msrb.mxu3 %v2280_v27  ;;  %v2435_v26 = vld [vmem:[#allocation8 + $0xe8] sm:$0xf]  ;;  %v2730_v27 = vld [vmem:[#allocation8 + $0xf4] sm:$0xf0] }
  0xed   :  { %v2436_v30 = vor.u32 %v2730_v27, %v2435_v26  ;;  %v2714_v26 = vld [vmem:[#allocation8 + $0x74] sm:$0xf0] }
  0xf2   :  { %1022 = vmatpush.bf16.xpose.msrb.mxu0 %v2204_v36  ;;  %v2437_v36 = vld [vmem:[#allocation8 + $0xf8] sm:$0xf0] }
  0xf3   :  { %1036 = vmatpush.bf16.xpose.msrb.mxu1 %v2208_v37  ;;  %v2440_v37 = vor.u32 %v2728_v35, %v2437_v36  ;;  %v2332_v35 = vor.u32 %v2705_v29, %v2331_v28  ;;  %v2336_v36 = vor.u32 %v2703_v31, %v2333_v32  ;;  %v2323_v29 = vld [vmem:[#allocation8 + $0x8] sm:$0xf] }
  0xf4   :  { %1050 = vmatpush.bf16.xpose.msrb.mxu2 %v2268_v38  ;;  %1064 = vmatpush.bf16.xpose.msrb.mxu3 %v2272_v39  ;;  %v2419_v38 = vld [vmem:[#allocation8 + $0xc8] sm:$0xf]  ;;  %v859_v39 = vpop.f32.mrf.mxu0 }
  0xfa   :  { %1023 = vmatpush.bf16.xpose.msrb.mxu0 %v2196_v48  ;;  %v2421_v48 = vld [vmem:[#allocation8 + $0xd8] sm:$0xf0] }
  0xfb   :  { %1037 = vmatpush.bf16.xpose.msrb.mxu1 %v2200_v49  ;;  %v887_v49 = vpop.f32.mrf.mxu2 }
  0xfc   :  { %1051 = vmatpush.bf16.xpose.msrb.mxu2 %v2260_v50  ;;  %1065 = vmatpush.bf16.xpose.msrb.mxu3 %v2264_v51  ;;  %v901_v50 = vpop.f32.mrf.mxu3  ;;  %v2424_v51 = vor.u32 %v2724_v47, %v2421_v48  ;;  %v861_v60 = vpop.f32.mrf.mxu0  ;;  %v2555_v47 = vld [vmem:[#allocation8 + $0x1e0] sm:$0xf]  ;;  %v2761_v48 = vld [vmem:[#allocation8 + $0x1ec] sm:$0xf0] }
 0x102   :  { %1024 = vmatpush.bf16.xpose.msrb.mxu0 %v2188_v62  ;;  %v2404_v62 = vor.u32 %v2722_v59, %v2403_v55 }
 0x103   :  { %1038 = vmatpush.bf16.xpose.msrb.mxu1 %v2192_v63  ;;  %v2364_v63 = vor.u32 %v2713_v53, %v2363_v52  ;;  %v889_v13 = vpop.f32.mrf.mxu2  ;;  %v2557_v52 = vld [vmem:[#allocation8 + $0x1f0] sm:$0xf0]  ;;  %v2316_v53 = vor.u32 %v2701_v41, %v2315_v40 }
 0x104   :  { %1052 = vmatpush.bf16.xpose.msrb.mxu2 %v2252_v0  ;;  %1066 = vmatpush.bf16.xpose.msrb.mxu3 %v2256_v1  ;;  %v2368_v1 = vor.u32 %v2711_v56, %v2365_v58  ;;  %v903_v14 = vpop.f32.mrf.mxu3  ;;  %v2556_v58 = vor.u32 %v2761_v48, %v2555_v47 }
 0x105   :  { %v2976_v21 = vadd.f32 %v903_v14, %v889_v13  ;;  %v2541_v13 = vld [vmem:[#allocation8 + $0x1d0] sm:$0xf0] }
 0x107   :  { %v2310_v27 = vmul.f32 -1.442695, %v2976_v21 }
 0x10a   :  { %1025 = vmatpush.bf16.xpose.msrb.mxu0 %v2180_v12 }
 0x10b   :  { %1039 = vmatpush.bf16.xpose.msrb.mxu1 %v2184_v15  ;;  %v2707_v15 = vld [vmem:[#allocation8 + $0x44] sm:$0xf] }
 0x10c   :  { %1053 = vmatpush.bf16.xpose.msrb.mxu2 %v2244_v16  ;;  %1067 = vmatpush.bf16.xpose.msrb.mxu3 %v2248_v17  ;;  %v2349_v16 = vld [vmem:[#allocation8 + $0x50] sm:$0xf0]  ;;  %v2716_v17 = vld [vmem:[#allocation8 + $0x8c] sm:$0xf] }
 0x10d   :  { %v2352_v22 = vor.u32 %v2707_v15, %v2349_v16  ;;  %v2540_v16 = vor.u32 %v2757_v10, %v2539_v9 }
 0x111   :  { %1026 = vmatmul.bf16.vlgmr.msrb.gmra.mxu0 %v2948_v54 }
 0x112   :  { %1634 = vmatpush.bf16.xpose.msra.mxu0 %v2428_v18  ;;  %1040 = vmatmul.bf16.vlgmr.msrb.gmra.mxu1 %v2950_v57  ;;  %v2389_v18 = vld [vmem:[#allocation8 + $0x98] sm:$0xf0] }
 0x113   :  { %1648 = vmatpush.bf16.xpose.msra.mxu1 %v2432_v19  ;;  %1054 = vmatmul.bf16.vlgmr.msrb.gmra.mxu2 %v2948_v54  ;;  %v2726_v54 = vld [vmem:[#allocation8 + $0xd4] sm:$0xf0]  ;;  %v2974_v19 = vadd.f32 %v901_v50, %v887_v49  ;;  %v2392_v23 = vor.u32 %v2716_v17, %v2389_v18  ;;  %v2356_v49 = vor.u32 %v2710_v44, %v2355_v43  ;;  %v2700_v43 = vld [vmem:[#allocation8 + $0xc] sm:$0xf]  ;;  %v2325_v44 = vld [vmem:[#allocation8 + $0x18] sm:$0xf0] }
 0x114   :  { %1068 = vmatmul.bf16.vlgmr.msrb.gmra.mxu3 %v2950_v57  ;;  %1662 = vmatpush.bf16.xpose.msra.mxu2 %v2436_v30  ;;  %v873_v57 = vpop.f32.mrf.mxu1  ;;  %v2420_v42 = vor.u32 %v2726_v54, %v2419_v38  ;;  %v2712_v38 = vld [vmem:[#allocation8 + $0x6c] sm:$0xf]  ;;  %v2373_v54 = vld [vmem:[#allocation8 + $0x78] sm:$0xf0] }
 0x115   :  { %1676 = vmatpush.bf16.xpose.msra.mxu3 %v2440_v37  ;;  %v2968_v0 = vadd.f32 %v873_v57, %v859_v39  ;;  %v2376_v57 = vor.u32 %v2712_v38, %v2373_v54  ;;  %v2751_v38 = vld [vmem:[#allocation8 + $0x1a4] sm:$0xf] }
 0x116   :  { %v3004_v15 = vpop.f32.mrf.mxu2 }
 0x117   :  { %v2305_v8 = vmul.f32 -1.442695, %v2968_v0 }
 0x118   :  { %v3006_v17 = vpop.f32.mrf.mxu3 }
 0x119   :  { %2771 = vpow2.f32 %v2305_v8 }
 0x11a   :  { %1635 = vmatpush.bf16.xpose.msra.mxu0 %v2412_v24  ;;  %v2306_v24 = vmul.f32 -1.442695, %v2974_v19 }
 0x11b   :  { %1649 = vmatpush.bf16.xpose.msra.mxu1 %v2416_v25  ;;  %v2371_v25 = vld [vmem:[#allocation8 + $0x68] sm:$0xf] }
 0x11c   :  { %1663 = vmatpush.bf16.xpose.msra.mxu2 %v2420_v42  ;;  %v875_v61 = vpop.f32.mrf.mxu1  ;;  %v2372_v30 = vor.u32 %v2714_v26, %v2371_v25  ;;  %v2699_v42 = vld [vmem:[#allocation8 + $0x4] sm:$0xf] }
 0x11d   :  { %1677 = vmatpush.bf16.xpose.msra.mxu3 %v2424_v51  ;;  %v2970_v3 = vadd.f32 %v875_v61, %v861_v60  ;;  %v2759_v51 = vld [vmem:[#allocation8 + $0x1e4] sm:$0xf]  ;;  %v2990_v60 = vpop.f32.mrf.mxu0 }
 0x11e   :  { %v2560_v61 = vor.u32 %v2759_v51, %v2557_v52 }
 0x11f   :  { %v2309_v12 = vmul.f32 -1.442695, %v2970_v3 }
 0x121   :  { %2773 = vpow2.f32 %v2309_v12  ;;  %v2755_v12 = vld [vmem:[#allocation8 + $0x1c4] sm:$0xf] }
 0x122   :  { %1636 = vmatpush.bf16.xpose.msra.mxu0 %v2396_v33  ;;  %v2772_v33 = vpop.eup %2771  ;;  %2775 = vpow2.f32 %v2306_v24  ;;  %v2544_v18 = vor.u32 %v2755_v12, %v2541_v13  ;;  %v2758_v12 = vld [vmem:[#allocation8 + $0x1d4] sm:$0xf0] }
 0x123   :  { %1650 = vmatpush.bf16.xpose.msra.mxu1 %v2400_v34  ;;  %2777 = vpow2.f32 %v2310_v27  ;;  %v2980_v37 = vadd.f32 1.0, %v2772_v33  ;;  %v2563_v33 = vld [vmem:[#allocation8 + $0x1e8] sm:$0xf] }
 0x124   :  { %1664 = vmatpush.bf16.xpose.msra.mxu2 %v2404_v62  ;;  %v2708_v62 = vld [vmem:[#allocation8 + $0x4c] sm:$0xf] }
 0x125   :  { %1678 = vmatpush.bf16.xpose.msra.mxu3 %v2408_v5  ;;  %2779 = vrcp.f32 %v2980_v37  ;;  %v2339_v5 = vld [vmem:[#allocation8 + $0x28] sm:$0xf]  ;;  %v3012_v28 = vpop.f32.mrf.mxu0  ;;  %vm1111_vm0 = vweird.f32 %v2980_v37  ;;  %v1117_v47 = vand.u32 2147483648, %v2980_v37 }
 0x126   :  { %v2340_v8 = vor.u32 %v2706_v6, %v2339_v5  ;;  %v3042_v5 = vpop.f32.mrf.mxu3 }
 0x127   :  { %v2774_v34 = vpop.eup %2773 }
 0x128   :  { %v2982_v39 = vadd.f32 1.0, %v2774_v34  ;;  %v2762_v34 = vld [vmem:[#allocation8 + $0x1f4] sm:$0xf0] }
 0x129   :  { %v2564_v54 = vor.u32 %v2762_v34, %v2563_v33 }
 0x12a   :  { %1637 = vmatpush.bf16.xpose.msra.mxu0 %v2380_v45  ;;  %v2776_v45 = vpop.eup %2775  ;;  %2781 = vrcp.f32 %v2982_v39  ;;  %vm1171_vm2 = vweird.f32 %v2982_v39 }
 0x12b   :  { %1651 = vmatpush.bf16.xpose.msra.mxu1 %v2384_v46  ;;  %v2317_v46 = vld [vmem:[#allocation8 + $0x10] sm:$0xf0]  ;;  %v2778_v50 = vpop.eup %2777  ;;  %v2986_v55 = vadd.f32 1.0, %v2776_v45 }
 0x12c   :  { %1665 = vmatpush.bf16.xpose.msra.mxu2 %v2388_v11  ;;  %v2320_v56 = vor.u32 %v2699_v42, %v2317_v46  ;;  %v2988_v59 = vadd.f32 1.0, %v2778_v50  ;;  %v2994_v4 = vpop.eup %2779  ;;  %v2525_v42 = vld [vmem:[#allocation8 + $0x1b0] sm:$0xf0]  ;;  %v1115_v46 = vand.u32 2147483647, %v2980_v37  ;;  %v2328_v50 = vor.u32 %v2700_v43, %v2325_v44 }
 0x12d   :  { %1679 = vmatpush.bf16.xpose.msra.mxu3 %v2392_v23  ;;  %2783 = vrcp.f32 %v2986_v55  ;;  %v1107_v11 = vmul.f32 %v2994_v4, %v2980_v37  ;;  %vm1112_vm1 = vweird.f32 %v2994_v4  ;;  %vm1126_vm7 = vweird.f32 %v2986_v55 }
 0x12e   :  { %2785 = vrcp.f32 %v2988_v59  ;;  %vm3036_vm4 = vmor %vm1111_vm0, %vm1112_vm1  ;;  %vm3052_vm6 = vcmp.eq.f32.partialorder %v1115_v46, 8.507059e+37  ;;  %vm1186_vm10 = vweird.f32 %v2988_v59  ;;  %v1130_v34 = vand.u32 2147483647, %v2986_v55  ;;  %v2549_v46 = vld [vmem:[#allocation8 + $0x1d8] sm:$0xf0] }
 0x12f   :  { %v1108_v24 = vsub.f32 1.0, %v1107_v11  ;;  %v2547_v11 = vld [vmem:[#allocation8 + $0x1c8] sm:$0xf] }
 0x130   :  { %v2996_v7 = vpop.eup %2781  ;;  %vm1131_vm14 = vcmp.eq.f32.partialorder %v1130_v34, 8.507059e+37  ;;  %v2477_v34 = vld [vmem:[#allocation8 + $0x150] sm:$0xf0] }
 0x131   :  { %v1167_v14 = vmul.f32 %v2996_v7, %v2982_v39  ;;  %vm1172_vm3 = vweird.f32 %v2996_v7 }
 0x132   :  { %1638 = vmatpush.bf16.xpose.msra.mxu0 %v2364_v63  ;;  %v2357_v63 = vld [vmem:[#allocation8 + $0x58] sm:$0xf0]  ;;  %vm3048_vm5 = vmor %vm1171_vm2, %vm1172_vm3 }
 0x133   :  { %1652 = vmatpush.bf16.xpose.msra.mxu1 %v2368_v1  ;;  %v2992_v1 = vpop.f32.mrf.mxu1  ;;  %v2360_v2 = vor.u32 %v2708_v62, %v2357_v63  ;;  %v3008_v23 = vpop.eup %2783  ;;  %v1168_v27 = vsub.f32 1.0, %v1167_v14  ;;  %v1118_v14 = vor.u32 1.1754944e-38, %v1117_v47  ;;  %v2745_v62 = vld [vmem:[#allocation8 + $0x16c] sm:$0xf0] }
 0x134   :  { %1666 = vmatpush.bf16.xpose.msra.mxu2 %v2372_v30  ;;  %v3010_v26 = vpop.eup %2785  ;;  %v2702_v30 = vld [vmem:[#allocation8 + $0x14] sm:$0xf0]  ;;  %v1122_v40 = vmul.f32 %v3008_v23, %v2986_v55  ;;  %vm1127_vm8 = vweird.f32 %v3008_v23 }
 0x135   :  { %1680 = vmatpush.bf16.xpose.msra.mxu3 %v2376_v57  ;;  %v2324_v32 = vor.u32 %v2702_v30, %v2323_v29  ;;  %v1109_v57 = vmul.f32 %v2994_v4, %v1108_v24  ;;  %v1182_v41 = vmul.f32 %v3010_v26, %v2988_v59  ;;  %v1169_v45 = vmul.f32 %v2996_v7, %v1168_v27  ;;  %v2747_v27 = vld [vmem:[#allocation8 + $0x184] sm:$0xf]  ;;  %v2509_v29 = vld [vmem:[#allocation8 + $0x190] sm:$0xf0]  ;;  %vm3074_vm12 = vmor %vm1126_vm7, %vm1127_vm8 }
 0x136   :  { %v1123_v52 = vsub.f32 1.0, %v1122_v40  ;;  %vm1187_vm11 = vweird.f32 %v3010_v26  ;;  %v1190_v40 = vand.u32 2147483647, %v2988_v59 }
 0x137   :  { %v1110_v51 = vadd.f32 %v2994_v4, %v1109_v57  ;;  %v1170_v63 = vadd.f32 %v2996_v7, %v1169_v45  ;;  %vm3082_vm13 = vmor %vm1186_vm10, %vm1187_vm11 }
 0x138   :  { %vm1191_vm15 = vcmp.eq.f32.partialorder %v1190_v40, 8.507059e+37 }
 0x139   :  { %v1174_v30 = vsel %vm3048_vm5, %v2996_v7, %v1170_v63  ;;  %v3113_v7 = vadd.f32 %v3006_v17, %v3004_v15  ;;  %v2737_v15 = vld [vmem:[#allocation8 + $0x12c] sm:$0xf0] }
 0x13a   :  { %1639 = vmatpush.bf16.xpose.msra.mxu0 %v2348_v20  ;;  %v2704_v20 = vld [vmem:[#allocation8 + $0x2c] sm:$0xf] }
 0x13b   :  { %1653 = vmatpush.bf16.xpose.msra.mxu1 %v2352_v22  ;;  %v2341_v22 = vld [vmem:[#allocation8 + $0x38] sm:$0xf0]  ;;  %v3014_v31 = vpop.f32.mrf.mxu1 }
 0x13c   :  { %1667 = vmatpush.bf16.xpose.msra.mxu2 %v2356_v49  ;;  %v2344_v25 = vor.u32 %v2704_v20, %v2341_v22  ;;  %v2528_v49 = vor.u32 %v2751_v38, %v2525_v42  ;;  %v2548_v20 = vor.u32 %v2758_v12, %v2547_v11  ;;  %v1124_v22 = vmul.f32 %v3008_v23, %v1123_v52  ;;  %v2756_v42 = vld [vmem:[#allocation8 + $0x1cc] sm:$0xf]  ;;  %v2754_v52 = vld [vmem:[#allocation8 + $0x1b4] sm:$0xf0] }
 0x13d   :  { %1681 = vmatpush.bf16.xpose.msra.mxu3 %v2360_v2  ;;  %v1175_v2 = vand.u32 2147483647, %v2982_v39 }
 0x13e   :  { %v1125_v38 = vadd.f32 %v3008_v23, %v1124_v22 }
 0x13f   :  { %vm1176_vm9 = vcmp.eq.f32.partialorder %v1175_v2, 8.507059e+37 }
 0x140   :  { %v1129_v2 = vsel %vm3074_vm12, %v3008_v23, %v1125_v38  ;;  %v3098_v23 = vadd.f32 %v2992_v1, %v2990_v60  ;;  %v2515_v60 = vld [vmem:[#allocation8 + $0x188] sm:$0xf]  ;;  %v2750_v1 = vld [vmem:[#allocation8 + $0x194] sm:$0xf0] }
 0x142   :  { %1640 = vmatpush.bf16.xpose.msra.mxu0 %v2332_v35  ;;  %v2523_v35 = vld [vmem:[#allocation8 + $0x1a0] sm:$0xf] }
 0x143   :  { %1654 = vmatpush.bf16.xpose.msra.mxu1 %v2336_v36  ;;  %v2753_v36 = vld [vmem:[#allocation8 + $0x1ac] sm:$0xf0] }
 0x144   :  { %1668 = vmatpush.bf16.xpose.msra.mxu2 %v2340_v8  ;;  %v2524_v48 = vor.u32 %v2753_v36, %v2523_v35  ;;  %v2565_v8 = vld [vmem:[#allocation8 + $0x1f8] sm:$0xf0]  ;;  %v1192_v35 = vand.u32 2147483648, %v2988_v59  ;;  %v2512_v36 = vor.u32 %v2747_v27, %v2509_v29  ;;  %v2475_v29 = vld [vmem:[#allocation8 + $0x140] sm:$0xf] }
 0x145   :  { %1682 = vmatpush.bf16.xpose.msra.mxu3 %v2344_v25 }
 0x14a   :  { %1641 = vmatpush.bf16.xpose.msra.mxu0 %v2316_v53  ;;  %v1177_v53 = vand.u32 2147483648, %v2982_v39  ;;  %v1114_v39 = vsel %vm3036_vm4, %v2994_v4, %v1110_v51  ;;  %v2531_v51 = vld [vmem:[#allocation8 + $0x1a8] sm:$0xf] }
 0x14b   :  { %1655 = vmatpush.bf16.xpose.msra.mxu1 %v2320_v56  ;;  %v1183_v56 = vsub.f32 1.0, %v1182_v41  ;;  %v1119_v33 = vsel %vm3052_vm6, %v1118_v14, %v1114_v39  ;;  %v2532_v63 = vor.u32 %v2754_v52, %v2531_v51 }
 0x14c   :  { %1669 = vmatpush.bf16.xpose.msra.mxu2 %v2324_v32  ;;  %v1178_v24 = vor.u32 1.1754944e-38, %v1177_v53  ;;  %v1132_v32 = vand.u32 2147483648, %v2986_v55  ;;  %v1226_v47 = vmul.f32 %v1119_v33, %v2968_v0  ;;  %v2739_v33 = vld [vmem:[#allocation8 + $0x144] sm:$0xf]  ;;  %v2308_v55 = vmul.f32 -1.442695, %v3113_v7 }
 0x14d   :  { %1683 = vmatpush.bf16.xpose.msra.mxu3 %v2328_v50  ;;  %v1184_v25 = vmul.f32 %v3010_v26, %v1183_v56  ;;  %v2552_v50 = vor.u32 %v2756_v42, %v2549_v46  ;;  %v1193_v56 = vor.u32 1.1754944e-38, %v1192_v35  ;;  %v2746_v42 = vld [vmem:[#allocation8 + $0x174] sm:$0xf0]  ;;  %v2461_v46 = vld [vmem:[#allocation8 + $0x130] sm:$0xf0] }
 0x14e   :  { %v971_v6 = vpop.f32.mrf.mxu0 }
 0x14f   :  { %v985_v37 = vpop.f32.mrf.mxu1  ;;  %v1185_v57 = vadd.f32 %v3010_v26, %v1184_v25 }
 0x150   :  { %v986_v43 = vadd.f32 %v985_v37, %v971_v6  ;;  %v2743_v6 = vld [vmem:[#allocation8 + $0x164] sm:$0xf] }
 0x151   :  { %v1189_v0 = vsel %vm3082_vm13, %v3010_v26, %v1185_v57  ;;  %v2752_v26 = vld [vmem:[#allocation8 + $0x1ac] sm:$0xf] }
 0x152   :  { %1690 = vmatpush.bf16.xpose.msrb.mxu0 %v2556_v58  ;;  %v3030_v58 = vpop.f32.mrf.mxu2  ;;  %v1194_v11 = vsel %vm1191_vm15, %v1193_v56, %v1189_v0  ;;  %v2483_v56 = vld [vmem:[#allocation8 + $0x148] sm:$0xf]  ;;  %v2445_v0 = vld [vmem:[#allocation8 + $0x110] sm:$0xf0] }
 0x153   :  { %1704 = vmatpush.bf16.xpose.msrb.mxu1 %v2560_v61  ;;  %v2760_v61 = vld [vmem:[#allocation8 + $0x1ec] sm:$0xf]  ;;  %v1231_v25 = vmul.f32 %v1194_v11, %v2976_v21  ;;  %v3117_v57 = vadd.f32 %v3042_v5, %v3030_v58  ;;  %v2485_v11 = vld [vmem:[#allocation8 + $0x158] sm:$0xf0] }
 0x154   :  { %1718 = vmatpush.bf16.xpose.msrb.mxu2 %v2564_v54  ;;  %v2568_v10 = vor.u32 %v2760_v61, %v2565_v8  ;;  %v1179_v54 = vsel %vm1176_vm9, %v1178_v24, %v1174_v30  ;;  %v2491_v61 = vld [vmem:[#allocation8 + $0x160] sm:$0xf]  ;;  %v2493_v8 = vld [vmem:[#allocation8 + $0x170] sm:$0xf0]  ;;  %v2741_v30 = vld [vmem:[#allocation8 + $0x14c] sm:$0xf0] }
 0x155   :  { %v1230_v53 = vmul.f32 %v1179_v54, %v2970_v3  ;;  %v1234_v3 = vmul.f32 %v1226_v47, %v986_v43  ;;  %v2492_v37 = vor.u32 %v2745_v62, %v2491_v61  ;;  %v2496_v13 = vor.u32 %v2743_v6, %v2493_v8  ;;  %v2459_v43 = vld [vmem:[#allocation8 + $0x120] sm:$0xf]  ;;  %v2733_v62 = vld [vmem:[#allocation8 + $0x10c] sm:$0xf0] }
 0x156   :  { %1732 = vmatpush.bf16.xpose.msrb.mxu3 %v2568_v10  ;;  %v973_v45 = vpop.f32.mrf.mxu0  ;;  %v2476_v38 = vor.u32 %v2741_v30, %v2475_v29  ;;  %v2480_v54 = vor.u32 %v2739_v33, %v2477_v34  ;;  %v2460_v5 = vor.u32 %v2737_v15, %v2459_v43  ;;  %v2443_v61 = vld [vmem:[#allocation8 + $0x100] sm:$0xf]  ;;  %v2732_v34 = vld [vmem:[#allocation8 + $0x10c] sm:$0xf] }
 0x158   :  { %v1013_v44 = vpop.f32.mrf.mxu3 }
 0x15a   :  { %1691 = vmatpush.bf16.xpose.msrb.mxu0 %v2540_v16  ;;  %v2507_v16 = vld [vmem:[#allocation8 + $0x180] sm:$0xf]  ;;  %v999_v41 = vpop.f32.mrf.mxu2 }
 0x15b   :  { %1705 = vmatpush.bf16.xpose.msrb.mxu1 %v2544_v18  ;;  %v2749_v18 = vld [vmem:[#allocation8 + $0x18c] sm:$0xf0]  ;;  %v1014_v14 = vadd.f32 %v1013_v44, %v999_v41  ;;  %v2499_v41 = vld [vmem:[#allocation8 + $0x168] sm:$0xf]  ;;  %v2312_v44 = vmul.f32 -1.442695, %v3117_v57 }
 0x15c   :  { %v2508_v4 = vor.u32 %v2749_v18, %v2507_v16  ;;  %1719 = vmatpush.bf16.xpose.msrb.mxu2 %v2548_v20  ;;  %v2533_v18 = vld [vmem:[#allocation8 + $0x1b8] sm:$0xf0]  ;;  %v3102_v20 = vadd.f32 %v3014_v31, %v3012_v28  ;;  %v2500_v17 = vor.u32 %v2746_v42, %v2499_v41 }
 0x15d   :  { %v2536_v22 = vor.u32 %v2752_v26, %v2533_v18  ;;  %v2738_v26 = vld [vmem:[#allocation8 + $0x134] sm:$0xf0] }
 0x15e   :  { %1733 = vmatpush.bf16.xpose.msrb.mxu3 %v2552_v50  ;;  %v2311_v35 = vmul.f32 -1.442695, %v3102_v20  ;;  %v2501_v50 = vld [vmem:[#allocation8 + $0x178] sm:$0xf0] }
 0x160   :  { %v1015_v39 = vpop.f32.mrf.mxu3 }
 0x162   :  { %1692 = vmatpush.bf16.xpose.msrb.mxu0 %v2524_v48  ;;  %v1133_v48 = vor.u32 1.1754944e-38, %v1132_v32  ;;  %v1001_v16 = vpop.f32.mrf.mxu2  ;;  %v2516_v32 = vor.u32 %v2750_v1, %v2515_v60  ;;  %v2469_v60 = vld [vmem:[#allocation8 + $0x138] sm:$0xf0] }
 0x163   :  { %1706 = vmatpush.bf16.xpose.msrb.mxu1 %v2528_v49  ;;  %v987_v49 = vpop.f32.mrf.mxu1  ;;  %v1016_v27 = vadd.f32 %v1015_v39, %v1001_v16  ;;  %v2467_v16 = vld [vmem:[#allocation8 + $0x128] sm:$0xf] }
 0x164   :  { %v988_v59 = vadd.f32 %v987_v49, %v973_v45  ;;  %v1134_v10 = vsel %vm1131_vm14, %v1133_v48, %v1129_v2  ;;  %1720 = vmatpush.bf16.xpose.msrb.mxu2 %v2532_v63  ;;  %v2735_v45 = vld [vmem:[#allocation8 + $0x124] sm:$0xf]  ;;  %v2744_v49 = vld [vmem:[#allocation8 + $0x16c] sm:$0xf]  ;;  %v2468_v39 = vor.u32 %v2738_v26, %v2467_v16 }
 0x165   :  { %v1227_v24 = vmul.f32 %v1134_v10, %v2974_v19  ;;  %v1239_v31 = vmul.f32 %v1231_v25, %v1016_v27  ;;  %v2748_v19 = vld [vmem:[#allocation8 + $0x18c] sm:$0xf]  ;;  %v2464_v48 = vor.u32 %v2735_v45, %v2461_v46  ;;  %v2504_v52 = vor.u32 %v2744_v49, %v2501_v50  ;;  %v2731_v2 = vld [vmem:[#allocation8 + $0x104] sm:$0xf] }
 0x166   :  { %v1238_v9 = vmul.f32 %v1230_v53, %v988_v59  ;;  %1734 = vmatpush.bf16.xpose.msrb.mxu3 %v2536_v22  ;;  %v2742_v59 = vld [vmem:[#allocation8 + $0x154] sm:$0xf0]  ;;  %v2740_v10 = vld [vmem:[#allocation8 + $0x14c] sm:$0xf] }
 0x167   :  { %v1235_v28 = vmul.f32 %v1227_v24, %v1014_v14  ;;  %v2484_v63 = vor.u32 %v2742_v59, %v2483_v56  ;;  %v2488_v14 = vor.u32 %v2740_v10, %v2485_v11  ;;  %v2736_v27 = vld [vmem:[#allocation8 + $0x12c] sm:$0xf] }
 0x168   :  { %v3094_v12 = vpack.c.bf16 %v1238_v9, %v1234_v3  ;;  %v2444_v3 = vor.u32 %v2733_v62, %v2443_v61  ;;  %v2448_v9 = vor.u32 %v2731_v2, %v2445_v0  ;;  %v2472_v1 = vor.u32 %v2736_v27, %v2469_v60 }
 0x169   :  { %v3109_v21 = vpack.c.bf16 %v1239_v31, %v1235_v28 }
 0x16a   :  { %1693 = vmatpush.bf16.xpose.msrb.mxu0 %v2508_v4  ;;  %v2307_v4 = vmul.f32 -1.442695, %v3098_v23 }
 0x16b   :  { %1707 = vmatpush.bf16.xpose.msrb.mxu1 %v2512_v36  ;;  %1642 = vmatmul.bf16.vlgmr.msra.gmra.mxu0 %v3094_v12  ;;  %v2517_v36 = vld [vmem:[#allocation8 + $0x198] sm:$0xf0] }
 0x16c   :  { %1721 = vmatpush.bf16.xpose.msrb.mxu2 %v2516_v32  ;;  %2787 = vpow2.f32 %v2307_v4  ;;  %1656 = vmatmul.bf16.vlgmr.msra.gmra.mxu1 %v3109_v21  ;;  %v2520_v40 = vor.u32 %v2748_v19, %v2517_v36  ;;  %v2451_v32 = vld [vmem:[#allocation8 + $0x108] sm:$0xf]  ;;  %v2734_v4 = vld [vmem:[#allocation8 + $0x114] sm:$0xf0] }
 0x16d   :  { %2789 = vpow2.f32 %v2311_v35  ;;  %v2452_v33 = vor.u32 %v2734_v4, %v2451_v32  ;;  %v2453_v35 = vld [vmem:[#allocation8 + $0x118] sm:$0xf0] }
 0x16e   :  { %1735 = vmatpush.bf16.xpose.msrb.mxu3 %v2520_v40  ;;  %2791 = vpow2.f32 %v2308_v55 }
 0x16f   :  { %2793 = vpow2.f32 %v2312_v44 }
 0x172   :  { %1694 = vmatpush.bf16.xpose.msrb.mxu0 %v2492_v37  ;;  %v2788_v58 = vpop.eup %2787 }
 0x173   :  { %1708 = vmatpush.bf16.xpose.msrb.mxu1 %v2496_v13  ;;  %v2790_v47 = vpop.eup %2789  ;;  %v3122_v51 = vadd.f32 1.0, %v2788_v58 }
 0x174   :  { %1722 = vmatpush.bf16.xpose.msrb.mxu2 %v2500_v17  ;;  %v3124_v53 = vadd.f32 1.0, %v2790_v47  ;;  %v2792_v6 = vpop.eup %2791 }
 0x175   :  { %2795 = vrcp.f32 %v3122_v51  ;;  %v2794_v8 = vpop.eup %2793  ;;  %v3128_v37 = vadd.f32 1.0, %v2792_v6  ;;  %vm1141_vm0 = vweird.f32 %v3122_v51  ;;  %v1147_v40 = vand.u32 2147483648, %v3122_v51 }
 0x176   :  { %1736 = vmatpush.bf16.xpose.msrb.mxu3 %v2504_v52  ;;  %2797 = vrcp.f32 %v3124_v53  ;;  %v3130_v13 = vadd.f32 1.0, %v2794_v8  ;;  %vm1201_vm2 = vweird.f32 %v3124_v53  ;;  %v1207_v55 = vand.u32 2147483648, %v3124_v53 }
 0x177   :  { %2799 = vrcp.f32 %v3128_v37  ;;  %v1205_v44 = vand.u32 2147483647, %v3124_v53  ;;  %vm1156_vm7 = vweird.f32 %v3128_v37  ;;  %v1162_v52 = vand.u32 2147483648, %v3128_v37 }
 0x178   :  { %2801 = vrcp.f32 %v3130_v13  ;;  %v1208_v49 = vor.u32 1.1754944e-38, %v1207_v55  ;;  %vm1216_vm10 = vweird.f32 %v3130_v13  ;;  %v1160_v56 = vand.u32 2147483647, %v3128_v37 }
 0x179   :  { %vm1206_vm9 = vcmp.eq.f32.partialorder %v1205_v44, 8.507059e+37  ;;  %v1222_v59 = vand.u32 2147483648, %v3130_v13  ;;  %v1220_v0 = vand.u32 2147483647, %v3130_v13  ;;  %v1163_v10 = vor.u32 1.1754944e-38, %v1162_v52 }
 0x17a   :  { %1695 = vmatpush.bf16.xpose.msrb.mxu0 %v2476_v38  ;;  %vm1161_vm14 = vcmp.eq.f32.partialorder %v1160_v56, 8.507059e+37 }
 0x17b   :  { %1709 = vmatpush.bf16.xpose.msrb.mxu1 %v2480_v54  ;;  %v3132_v18 = vpop.eup %2795  ;;  %v1145_v54 = vand.u32 2147483647, %v3122_v51  ;;  %v1223_v26 = vor.u32 1.1754944e-38, %v1222_v59  ;;  %vm1221_vm15 = vcmp.eq.f32.partialorder %v1220_v0, 8.507059e+37 }
 0x17c   :  { %1723 = vmatpush.bf16.xpose.msrb.mxu2 %v2484_v63  ;;  %v3134_v22 = vpop.eup %2797  ;;  %v1137_v24 = vmul.f32 %v3132_v18, %v3122_v51  ;;  %vm1142_vm1 = vweird.f32 %v3132_v18 }
 0x17d   :  { %v1197_v25 = vmul.f32 %v3134_v22, %v3124_v53  ;;  %v3143_v29 = vpop.eup %2799  ;;  %vm1202_vm3 = vweird.f32 %v3134_v22  ;;  %vm3162_vm4 = vmor %vm1141_vm0, %vm1142_vm1  ;;  %vm1146_vm6 = vcmp.eq.f32.partialorder %v1145_v54, 8.507059e+37 }
 0x17e   :  { %1737 = vmatpush.bf16.xpose.msrb.mxu3 %v2488_v14  ;;  %v1138_v30 = vsub.f32 1.0, %v1137_v24  ;;  %v3146_v28 = vpop.eup %2801  ;;  %vm3168_vm5 = vmor %vm1201_vm2, %vm1202_vm3  ;;  %vm1157_vm8 = vweird.f32 %v3143_v29 }
 0x17f   :  { %v1198_v31 = vsub.f32 1.0, %v1197_v25  ;;  %v1212_v36 = vmul.f32 %v3146_v28, %v3130_v13  ;;  %vm1217_vm11 = vweird.f32 %v3146_v28  ;;  %vm3188_vm12 = vmor %vm1156_vm7, %vm1157_vm8 }
 0x180   :  { %v1139_v19 = vmul.f32 %v3132_v18, %v1138_v30  ;;  %vm3194_vm13 = vmor %vm1216_vm10, %vm1217_vm11 }
 0x181   :  { %v1199_v38 = vmul.f32 %v3134_v22, %v1198_v31  ;;  %v1213_v43 = vsub.f32 1.0, %v1212_v36 }
 0x182   :  { %1696 = vmatpush.bf16.xpose.msrb.mxu0 %v2460_v5  ;;  %v1140_v41 = vadd.f32 %v3132_v18, %v1139_v19  ;;  %v1148_v5 = vor.u32 1.1754944e-38, %v1147_v40 }
 0x183   :  { %1710 = vmatpush.bf16.xpose.msrb.mxu1 %v2464_v48  ;;  %v1200_v17 = vadd.f32 %v3134_v22, %v1199_v38  ;;  %v1214_v50 = vmul.f32 %v3146_v28, %v1213_v43 }
 0x184   :  { %1724 = vmatpush.bf16.xpose.msrb.mxu2 %v2468_v39  ;;  %v1144_v47 = vsel %vm3162_vm4, %v3132_v18, %v1140_v41 }
 0x185   :  { %v1204_v51 = vsel %vm3168_vm5, %v3134_v22, %v1200_v17  ;;  %v1149_v53 = vsel %vm1146_vm6, %v1148_v5, %v1144_v47  ;;  %v1215_v2 = vadd.f32 %v3146_v28, %v1214_v50 }
 0x186   :  { %1738 = vmatpush.bf16.xpose.msrb.mxu3 %v2472_v1  ;;  %v1209_v63 = vsel %vm1206_vm9, %v1208_v49, %v1204_v51  ;;  %v1228_v14 = vmul.f32 %v1149_v53, %v3098_v23 }
 0x187   :  { %v1232_v16 = vmul.f32 %v1209_v63, %v3102_v20  ;;  %v1219_v39 = vsel %vm3194_vm13, %v3146_v28, %v1215_v2 }
 0x188   :  { %v1224_v27 = vsel %vm1221_vm15, %v1223_v26, %v1219_v39 }
 0x189   :  { %v1233_v32 = vmul.f32 %v1224_v27, %v3117_v57 }
 0x18a   :  { %1697 = vmatpush.bf16.xpose.msrb.mxu0 %v2444_v3 }
 0x18b   :  { %1711 = vmatpush.bf16.xpose.msrb.mxu1 %v2448_v9 }
 0x18c   :  { %1725 = vmatpush.bf16.xpose.msrb.mxu2 %v2452_v33 }
 0x18e   :  { %v1027_v45 = vpop.f32.mrf.mxu0 }
 0x18f   :  { %v1041_v58 = vpop.f32.mrf.mxu1 }
 0x190   :  { %v1042_v3 = vadd.f32 %v1041_v58, %v1027_v45 }
 0x191   :  { %1698 = vmatmul.bf16.vlgmr.msrb.gmra.mxu0 %v3094_v12  ;;  %v1152_v12 = vmul.f32 %v3143_v29, %v3128_v37 }
 0x192   :  { %1712 = vmatmul.bf16.vlgmr.msrb.gmra.mxu1 %v3109_v21  ;;  %v2456_v21 = vor.u32 %v2732_v34, %v2453_v35  ;;  %v1236_v22 = vmul.f32 %v1228_v14, %v1042_v3 }
 0x193   :  { %v1153_v42 = vsub.f32 1.0, %v1152_v12 }
 0x194   :  { %1739 = vmatpush.bf16.xpose.msrb.mxu3 %v2456_v21 }
 0x195   :  { %v1154_v48 = vmul.f32 %v3143_v29, %v1153_v42 }
 0x196   :  { %v1055_v6 = vpop.f32.mrf.mxu2  ;;  %v1029_v37 = vpop.f32.mrf.mxu0 }
 0x197   :  { %v1155_v61 = vadd.f32 %v3143_v29, %v1154_v48  ;;  %v1069_v9 = vpop.f32.mrf.mxu3  ;;  %v1043_v11 = vpop.f32.mrf.mxu1 }
 0x198   :  { %v1044_v18 = vadd.f32 %v1043_v11, %v1029_v37  ;;  %v1070_v23 = vadd.f32 %v1069_v9, %v1055_v6 }
 0x199   :  { %v1159_v13 = vsel %vm3188_vm12, %v3143_v29, %v1155_v61 }
 0x19a   :  { %v1240_v24 = vmul.f32 %v1232_v16, %v1044_v18  ;;  %v1164_v25 = vsel %vm1161_vm14, %v1163_v10, %v1159_v13 }
 0x19b   :  { %v1229_v30 = vmul.f32 %v1164_v25, %v3113_v7 }
 0x19c   :  { %v1248_v60 = vpack.c.bf16 %v1240_v24, %v1236_v22 }
 0x19d   :  { %v1237_v4 = vmul.f32 %v1229_v30, %v1070_v23 }
 0x19e   :  { %v1057_v1 = vpop.f32.mrf.mxu2  ;;  %1670 = vmatmul.bf16.vlgmr.msra.gmra.mxu2 %v1248_v60 }
 0x19f   :  { %v1071_v20 = vpop.f32.mrf.mxu3 }
 0x1a0   :  { %v1072_v29 = vadd.f32 %v1071_v20, %v1057_v1 }
 0x1a2   :  { %v1241_v31 = vmul.f32 %v1233_v32, %v1072_v29 }
 0x1a4   :  { %v1249_v33 = vpack.c.bf16 %v1241_v31, %v1237_v4 }
 0x1a6   :  { %1684 = vmatmul.bf16.vlgmr.msra.gmra.mxu3 %v1249_v33 }
 0x1ae   :  { %1726 = vmatmul.bf16.vlgmr.msrb.gmra.mxu2 %v1248_v60 }
 0x1b6   :  { %1740 = vmatmul.bf16.vlgmr.msrb.gmra.mxu3 %v1249_v33 }
 0x1e8   :  { %v1643_v28 = vpop.f32.mrf.mxu0 }
 0x1e9   :  { %v1657_v34 = vpop.f32.mrf.mxu1 }
 0x1ea   :  { %v1658_v41 = vadd.f32 %v1657_v34, %v1643_v28 }
 0x1f0   :  { %v1645_v19 = vpop.f32.mrf.mxu0 }
 0x1f1   :  { %v1659_v12 = vpop.f32.mrf.mxu1 }
 0x1f2   :  { %v1660_v5 = vadd.f32 %v1659_v12, %v1645_v19 }
 0x20e   :  { %v1699_v21 = vpop.f32.mrf.mxu0 }
 0x20f   :  { %v1713_v54 = vpop.f32.mrf.mxu1 }
 0x210   :  { %v1714_v57 = vadd.f32 %v1713_v54, %v1699_v21 }
 0x216   :  { %v1701_v44 = vpop.f32.mrf.mxu0 }
 0x217   :  { %v1715_v45 = vpop.f32.mrf.mxu1 }
 0x218   :  { %v1716_v47 = vadd.f32 %v1715_v45, %v1701_v44 }
 0x221   :  { %v1671_v35 = vpop.f32.mrf.mxu2 }
 0x222   :  { %v1672_v42 = vadd.f32 %v1671_v35, %v1658_v41 }
 0x229   :  { %v1685_v36 = vpop.f32.mrf.mxu3  ;;  %v1673_v38 = vpop.f32.mrf.mxu2 }
 0x22a   :  { %v1686_v15 = vadd.f32 %v1685_v36, %v1672_v42  ;;  %v1674_v48 = vadd.f32 %v1673_v38, %v1660_v5 }
 0x231   :  { %v1687_v40 = vpop.f32.mrf.mxu3  ;;  %v1727_v7 = vpop.f32.mrf.mxu2 }
 0x232   :  { %v1728_v55 = vadd.f32 %v1727_v7, %v1714_v57  ;;  %v1688_v51 = vadd.f32 %v1687_v40, %v1674_v48 }
 0x239   :  { %v1741_v43 = vpop.f32.mrf.mxu3  ;;  %v1729_v58 = vpop.f32.mrf.mxu2 }
 0x23a   :  { %v1742_v17 = vadd.f32 %v1741_v43, %v1728_v55  ;;  %v1730_v49 = vadd.f32 %v1729_v58, %v1716_v47 }
 0x23c   :  { %v1761_v46 = vpack.c.bf16 %v1742_v17, %v1686_v15 }
 0x23e   :  { %1763 = vst [vmem:[#allocation9] sm:$0xff] %v1761_v46 }
 0x241   :  { %v1743_v50 = vpop.f32.mrf.mxu3 }
 0x242   :  { %v1744_v52 = vadd.f32 %v1743_v50, %v1730_v49 }
 0x244   :  { %v1762_v53 = vpack.c.bf16 %v1744_v52, %v1688_v51 }
 0x246   :  { %1764 = vst [vmem:[#allocation9 + $0x8] sm:$0xff] %v1762_v53 }
 0x247   :  { %1777 = dma.vmem_to_hbm [thread:$0]  %s1770_s29, 256, %s1772_s5, [#allocation5], %s2906_s20, %s2906_s20, %s2907_s21  }
 0x248   :  { %2903 = dma.done.wait [#allocation5], 256  }
 0x249   :  { %2904 = vsyncadd [#allocation5], 4294967040 }
 0x24a   :  { %1782 = vsyncpa [#allocation4], 1 }
 0x24b   :  { %1783 = vsyncpa [#allocation7], 1 }
 0x24c   :  { %1784 = vsyncpa [#allocation5], 1 }

</bundles_post_ra>
